<compile_context>
chip_gen: v5e
topology: v5e:2x2
jax: 0.10.0
libtpu: 0.0.40
codegen_flags: <defaults>
</compile_context>

<pallas_src>
import functools

import jax
import jax.numpy as jnp
from jax import lax
from jax.experimental import pallas as pl
from jax.experimental.pallas import tpu as pltpu

LANE = 128      # node-feature lane width (tiny feature dims are zero-padded to this)
HALF = 64       # lane offset where the (x_j - x_i) half of the edge input is packed
TILE_E = 256    # edges processed per grid step


# ------------------------------------------------------------------ kernel ---
def _edgenet2_kernel(
    src_ref, dstg_ref, dsts_ref,            # (1,TILE_E,1), (1,TILE_E,1), (1,1,TILE_E)
    feat_in_ref, inv_deg_ref,                # (N_pad, LANE), (N_pad, 1)
    w1_ref, w2_ref, w3_ref,                  # (1,LANE,big), (1,big,big), (1,big,LANE)
    b1_ref, b2_ref, b3_ref,                  # (1,1,big), (1,1,big), (1,1,LANE)
    out_ref,                                 # (N_pad, LANE)
    acc_ref, feat_ref,                       # VMEM scratch, (N_pad, LANE) f32 each
    *, tile_e, n_pad,
):
    f32 = jnp.float32
    dot = functools.partial(jnp.dot, preferred_element_type=f32)
    one = f32(1.0)
    zero = f32(0.0)

    l = pl.program_id(0)                     # 0 = encoder EdgeConv, 1 = decoder EdgeConv
    t = pl.program_id(1)                     # edge-tile index
    nt = pl.num_programs(1)

    @pl.when(jnp.logical_and(l == 0, t == 0))
    def _stage_input():                      # node features live in scratch for both layers
        feat_ref[...] = feat_in_ref[...]

    @pl.when(t == 0)
    def _zero_acc():
        acc_ref[...] = jnp.zeros_like(acc_ref)

    src_col = src_ref[0]                     # (tile_e, 1) int32 -> gathers x_j
    dst_col = dstg_ref[0]                    # (tile_e, 1) int32 -> gathers x_i
    dst_row = dsts_ref[0]                    # (1, tile_e) int32 -> scatter destination

    # ---- vectorized gather on the MXU: one-hot(edge -> node) @ feat -----------
    # Padded edges carry index n_pad (out of range) -> all-zero one-hot rows.
    iota_g = lax.broadcasted_iota(jnp.int32, (tile_e, n_pad), 1)
    oh_i = jnp.where(iota_g == dst_col, one, zero)            # (tile_e, n_pad)
    oh_d = jnp.where(iota_g == src_col, one, zero) - oh_i     # rows give x_j - x_i

    feat = feat_ref[...]                                      # (n_pad, LANE)
    x_i = dot(oh_i, feat)                                     # (tile_e, LANE)
    x_d = dot(oh_d, feat)                                     # x_j - x_i

    # pack cat([x_i, x_j - x_i]) into one lane-dense tile (second half at lane HALF);
    # both halves are zero outside their few feature lanes, so the sum is exact.
    x_cat = x_i + pltpu.roll(x_d, shift=HALF, axis=1)

    # ---- per-edge MLP (first Linear fused into a single (LANE, big) weight) ---
    h = jnp.maximum(dot(x_cat, w1_ref[0]) + b1_ref[0], zero)
    h = jnp.maximum(dot(h, w2_ref[0]) + b2_ref[0], zero)
    h = dot(h, w3_ref[0]) + b3_ref[0]                         # (tile_e, LANE)

    # encoder message-nn ends in ReLU, decoder does not (scalar blend, VPU only)
    enc = jnp.where(l == 0, one, zero)
    h = enc * jnp.maximum(h, zero) + (one - enc) * h

    # ---- vectorized scatter-add on the MXU (exact segment-sum over dst) -------
    iota_s = lax.broadcasted_iota(jnp.int32, (n_pad, tile_e), 0)
    oh_sc = jnp.where(iota_s == dst_row, one, zero)           # (n_pad, tile_e)
    acc_ref[...] += dot(oh_sc, h)

    # ---- finalize layer: mean aggregation (acc * 1/deg) -----------------------
    last = t == nt - 1

    @pl.when(jnp.logical_and(last, l == 0))
    def _finish_encoder():
        feat_ref[...] = acc_ref[...] * inv_deg_ref[...]       # becomes decoder input

    @pl.when(jnp.logical_and(last, l == 1))
    def _finish_decoder():
        mean = acc_ref[...] * inv_deg_ref[...]
        lane = lax.broadcasted_iota(jnp.int32, mean.shape, 1)
        out_ref[...] = jnp.where(lane == 0, jnp.maximum(mean, zero), mean)


# ----------------------------------------------------------------- forward ---
def _round_up(v, m):
    return ((v + m - 1) // m) * m


def edgenet2_forward(x, edge_index, params, *, tile_e=TILE_E):
    (gamma, beta,
     w1a, w1b, b1, w2, b2, w3, b3,
     w4a, w4b, b4, w5, b5, w6, b6) = params

    n, f_in = x.shape
    hid = w3.shape[1]
    big = w2.shape[0]
    assert max(f_in, hid) <= HALF, "feature dims must fit below lane HALF"

    e = edge_index.shape[1]
    src = edge_index[0].astype(jnp.int32)
    dst = edge_index[1].astype(jnp.int32)

    # ---- BatchNorm1d (training-mode batch statistics), hoisted to the wrapper ----
    mean = jnp.mean(x, axis=0, keepdims=True)
    var = jnp.mean((x - mean) ** 2, axis=0, keepdims=True)
    xn = (x - mean) * lax.rsqrt(var + 1e-5) * gamma + beta

    # ---- node features: 2D lane-dense (N_pad, 128), zero padded -----------------
    n_pad = max(8, _round_up(n, 8))
    feat0 = jnp.pad(xn, ((0, n_pad - n), (0, LANE - f_in))).astype(jnp.float32)

    # ---- mean aggregation -> 1/deg column, broadcast in-kernel ------------------
    deg = jax.ops.segment_sum(jnp.ones((e,), jnp.float32), dst, num_segments=n)
    inv_deg = jnp.pad(1.0 / jnp.maximum(deg, 1.0), (0, n_pad - n)).reshape(n_pad, 1)

    # ---- edge list: pad to a tile multiple; padded edges use index n_pad --------
    #      (matches no one-hot entry -> gather zeros, scatter contributes nothing)
    e_pad = _round_up(max(e, 1), tile_e)
    pad = e_pad - e
    src_p = jnp.concatenate([src, jnp.full((pad,), n_pad, jnp.int32)])
    dst_p = jnp.concatenate([dst, jnp.full((pad,), n_pad, jnp.int32)])
    n_tiles = e_pad // tile_e
    src_g = src_p.reshape(n_tiles, tile_e, 1)     # gather orientation (sublane-major)
    dst_g = dst_p.reshape(n_tiles, tile_e, 1)
    dst_s = dst_p.reshape(n_tiles, 1, tile_e)     # scatter orientation (lane-major)

    # ---- weights: fuse Lin(2F -> big) into one (LANE, big) matrix per layer -----
    def fuse_first(wa, wb):
        w = jnp.zeros((LANE, big), jnp.float32)
        w = w.at[:wa.shape[0]].set(wa)                 # rows applied to x_i
        w = w.at[HALF:HALF + wb.shape[0]].set(wb)      # rows applied to (x_j - x_i)
        return w

    def pad_cols(w):
        return jnp.pad(w, ((0, 0), (0, LANE - w.shape[1])))

    w1s = jnp.stack([fuse_first(w1a, w1b), fuse_first(w4a, w4b)])   # (2, LANE, big)
    w2s = jnp.stack([w2, w5])                                       # (2, big, big)
    w3s = jnp.stack([pad_cols(w3), pad_cols(w6)])                   # (2, big, LANE)
    b1s = jnp.stack([b1, b4])                                       # (2, 1, big)
    b2s = jnp.stack([b2, b5])                                       # (2, 1, big)
    b3s = jnp.stack([pad_cols(b3), pad_cols(b6)])                   # (2, 1, LANE)

    kernel = functools.partial(_edgenet2_kernel, tile_e=tile_e, n_pad=n_pad)

    edge_specs = [
        pl.BlockSpec((1, tile_e, 1), lambda l, t: (t, 0, 0)),
        pl.BlockSpec((1, tile_e, 1), lambda l, t: (t, 0, 0)),
        pl.BlockSpec((1, 1, tile_e), lambda l, t: (t, 0, 0)),
    ]
    resident_specs = [
        pl.BlockSpec((n_pad, LANE), lambda l, t: (0, 0)),      # feat0
        pl.BlockSpec((n_pad, 1), lambda l, t: (0, 0)),         # inv_deg
    ]
    layer_specs = [
        pl.BlockSpec((1, LANE, big), lambda l, t: (l, 0, 0)),
        pl.BlockSpec((1, big, big), lambda l, t: (l, 0, 0)),
        pl.BlockSpec((1, big, LANE), lambda l, t: (l, 0, 0)),
        pl.BlockSpec((1, 1, big), lambda l, t: (l, 0, 0)),
        pl.BlockSpec((1, 1, big), lambda l, t: (l, 0, 0)),
        pl.BlockSpec((1, 1, LANE), lambda l, t: (l, 0, 0)),
    ]

    flops = int(2 * 2 * e_pad * (3 * n_pad * LANE + LANE * big + big * big + big * LANE))
    bytes_accessed = int(4 * (feat0.size + inv_deg.size + w1s.size + w2s.size + w3s.size
                              + b1s.size + b2s.size + b3s.size + 3 * e_pad + n_pad * LANE))

    out = pl.pallas_call(
        kernel,
        out_shape=jax.ShapeDtypeStruct((n_pad, LANE), jnp.float32),
        grid_spec=pltpu.PrefetchScalarGridSpec(
            num_scalar_prefetch=0,
            grid=(2, n_tiles),                       # (layer, edge tile), both sequential
            in_specs=edge_specs + resident_specs + layer_specs,
            out_specs=pl.BlockSpec((n_pad, LANE), lambda l, t: (0, 0)),
            scratch_shapes=[
                pltpu.VMEM((n_pad, LANE), jnp.float32),   # per-node accumulator
                pltpu.VMEM((n_pad, LANE), jnp.float32),   # current node features
            ],
        ),
        compiler_params=pltpu.CompilerParams(
            dimension_semantics=("arbitrary", "arbitrary"),   # reduction / dependent axes
            vmem_limit_bytes=32 * 1024 * 1024,
        ),
        cost_estimate=pl.CostEstimate(
            flops=flops, transcendentals=0, bytes_accessed=bytes_accessed),
    )(src_g, dst_g, dst_s, feat0, inv_deg, w1s, w2s, w3s, b1s, b2s, b3s)

    return out[:n, :f_in]


# ------------------------------------------------------------------ params ---
def init_params(key, input_dim=4, big_dim=32, hidden_dim=2):
    ks = jax.random.split(key, 12)

    def lin(k, fan_in, fan_out):
        kw, kb = jax.random.split(k)
        s = 1.0 / jnp.sqrt(fan_in)
        w = jax.random.uniform(kw, (fan_in, fan_out), jnp.float32, -s, s)
        b = jax.random.uniform(kb, (1, fan_out), jnp.float32, -s, s)
        return w, b

    gamma = jnp.ones((1, input_dim), jnp.float32)
    beta = jnp.zeros((1, input_dim), jnp.float32)

    # encoder: Lin(2*F -> big), Lin(big -> big), Lin(big -> hidden)
    w1, b1 = lin(ks[0], 2 * input_dim, big_dim)
    w2, b2 = lin(ks[1], big_dim, big_dim)
    w3, b3 = lin(ks[2], big_dim, hidden_dim)
    # decoder: Lin(2*hidden -> big), Lin(big -> big), Lin(big -> F)
    w4, b4 = lin(ks[3], 2 * hidden_dim, big_dim)
    w5, b5 = lin(ks[4], big_dim, big_dim)
    w6, b6 = lin(ks[5], big_dim, input_dim)

    return (
        gamma, beta,
        w1[:input_dim], w1[input_dim:], b1, w2, b2, w3, b3,
        w4[:hidden_dim], w4[hidden_dim:], b4, w5, b5, w6, b6,
    )


# --------------------------------------------------------------- reference ---
def reference_forward(x, edge_index, params):
    (gamma, beta, w1a, w1b, b1, w2, b2, w3, b3,
     w4a, w4b, b4, w5, b5, w6, b6) = params
    n = x.shape[0]
    src, dst = edge_index[0], edge_index[1]

    mean = jnp.mean(x, axis=0, keepdims=True)
    var = jnp.mean((x - mean) ** 2, axis=0, keepdims=True)
    xn = (x - mean) / jnp.sqrt(var + 1e-5) * gamma + beta

    def edge_conv(feat, wa, wb, bb, wm, bm, wo, bo, final_relu):
        x_i, x_j = feat[dst], feat[src]
        h = x_i @ wa + (x_j - x_i) @ wb + bb
        h = jnp.maximum(h, 0.0)
        h = jnp.maximum(h @ wm + bm, 0.0)
        h = h @ wo + bo
        if final_relu:
            h = jnp.maximum(h, 0.0)
        summed = jax.ops.segment_sum(h, dst, num_segments=n)
        cnt = jnp.maximum(jax.ops.segment_sum(jnp.ones((dst.shape[0],)), dst,
                                              num_segments=n), 1.0)
        return summed / cnt[:, None]

    xe = edge_conv(xn, w1a, w1b, b1, w2, b2, w3, b3, True)
    out = edge_conv(xe, w4a, w4b, b4, w5, b5, w6, b6, False)
    return out.at[:, 0].set(jnp.maximum(out[:, 0], 0.0))


# -------------------------------------------------------------------- main ---
if __name__ == "__main__":
    key = jax.random.PRNGKey(0)
    k_x, k_p = jax.random.split(key)

    N, F_IN = 8, 4
    x = jax.random.normal(k_x, (N, F_IN), jnp.float32)

    # simple deterministic directed graph: each node i -> (i+1)%N and (i+2)%N
    src = jnp.concatenate([jnp.arange(N), jnp.arange(N)])
    dst = jnp.concatenate([(jnp.arange(N) + 1) % N, (jnp.arange(N) + 2) % N])
    edge_index = jnp.stack([src, dst]).astype(jnp.int32)       # (2, 16)

    params = init_params(k_p, input_dim=F_IN, big_dim=32, hidden_dim=2)

    out = edgenet2_forward(x, edge_index, params)
    out = jax.block_until_ready(out)

    ref = reference_forward(x, edge_index, params)
    assert out.shape == (N, F_IN)
    assert jnp.allclose(out, ref, atol=1e-4, rtol=1e-4), "mismatch vs reference"

    print("KERNEL_OK")
</pallas_src>

<mosaic_0001>
module attributes {stable_mosaic.version = 11 : i64} {
  func.func @_edgenet2_kernel(%arg0: i32, %arg1: i32, %arg2: memref<1x256x1xi32, #tpu.memory_space<vmem>>, %arg3: memref<1x256x1xi32, #tpu.memory_space<vmem>>, %arg4: memref<1x1x256xi32, #tpu.memory_space<vmem>>, %arg5: memref<8x128xf32, #tpu.memory_space<vmem>>, %arg6: memref<8x1xf32, #tpu.memory_space<vmem>>, %arg7: memref<1x128x32xf32, #tpu.memory_space<vmem>>, %arg8: memref<1x32x32xf32, #tpu.memory_space<vmem>>, %arg9: memref<1x32x128xf32, #tpu.memory_space<vmem>>, %arg10: memref<1x1x32xf32, #tpu.memory_space<vmem>>, %arg11: memref<1x1x32xf32, #tpu.memory_space<vmem>>, %arg12: memref<1x1x128xf32, #tpu.memory_space<vmem>>, %arg13: memref<8x128xf32, #tpu.memory_space<vmem>>, %arg14: memref<8x128xf32, #tpu.memory_space<vmem>>, %arg15: memref<8x128xf32, #tpu.memory_space<vmem>>) attributes {dimension_semantics = [#tpu.dimension_semantics<arbitrary>, #tpu.dimension_semantics<arbitrary>], iteration_bounds = array<i64: 2, 1>, scalar_prefetch = 0 : i64, scratch_operands = 2 : i64, tpu.core_type = #tpu.core_type<tc>, window_params = [{transform_indices = @transform_0, window_bounds = array<i64: 1, 256, 1>}, {transform_indices = @transform_1, window_bounds = array<i64: 1, 256, 1>}, {transform_indices = @transform_2, window_bounds = array<i64: 1, 1, 256>}, {pipeline_mode = #tpu.pipeline_mode<synchronous>, transform_indices = @transform_3, window_bounds = array<i64: 8, 128>}, {pipeline_mode = #tpu.pipeline_mode<synchronous>, transform_indices = @transform_4, window_bounds = array<i64: 8, 1>}, {transform_indices = @transform_5, window_bounds = array<i64: 1, 128, 32>}, {transform_indices = @transform_6, window_bounds = array<i64: 1, 32, 32>}, {transform_indices = @transform_7, window_bounds = array<i64: 1, 32, 128>}, {transform_indices = @transform_8, window_bounds = array<i64: 1, 1, 32>}, {transform_indices = @transform_9, window_bounds = array<i64: 1, 1, 32>}, {transform_indices = @transform_10, window_bounds = array<i64: 1, 1, 128>}, {pipeline_mode = #tpu.pipeline_mode<synchronous>, transform_indices = @transform_11, window_bounds = array<i64: 8, 128>}]} {
    %c0_i32 = arith.constant 0 : i32
    %0 = arith.cmpi eq, %arg0, %c0_i32 : i32
    %c0_i32_0 = arith.constant 0 : i32
    %1 = arith.cmpi eq, %arg1, %c0_i32_0 : i32
    %2 = arith.andi %0, %1 : i1
    %3 = arith.extui %2 : i1 to i32
    %c0_i32_1 = arith.constant 0 : i32
    %4 = arith.cmpi ne, %3, %c0_i32_1 : i32
    scf.if %4 {
      %c0_59 = arith.constant 0 : index
      %c0_60 = arith.constant 0 : index
      %85 = vector.load %arg5[%c0_59, %c0_60] : memref<8x128xf32, #tpu.memory_space<vmem>>, vector<8x128xf32>
      %c0_61 = arith.constant 0 : index
      %c0_62 = arith.constant 0 : index
      %86 = vector.load %arg15[%c0_61, %c0_62] : memref<8x128xf32, #tpu.memory_space<vmem>>, vector<8x128xf32>
      tpu.vector_store %arg15[%c0_61, %c0_62], %85 {strides = array<i32>} : memref<8x128xf32, #tpu.memory_space<vmem>>, vector<8x128xf32>,
    } else {
    }
    %c0_i32_2 = arith.constant 0 : i32
    %5 = arith.cmpi eq, %arg1, %c0_i32_2 : i32
    %6 = arith.extui %5 : i1 to i32
    %c0_i32_3 = arith.constant 0 : i32
    %7 = arith.cmpi ne, %6, %c0_i32_3 : i32
    scf.if %7 {
      %cst_59 = arith.constant 0.000000e+00 : f32
      %85 = vector.broadcast %cst_59 : f32 to vector<8x128xf32>
      %c0_60 = arith.constant 0 : index
      %c0_61 = arith.constant 0 : index
      %86 = vector.load %arg14[%c0_60, %c0_61] : memref<8x128xf32, #tpu.memory_space<vmem>>, vector<8x128xf32>
      tpu.vector_store %arg14[%c0_60, %c0_61], %85 {strides = array<i32>} : memref<8x128xf32, #tpu.memory_space<vmem>>, vector<8x128xf32>,
    } else {
    }
    %c0 = arith.constant 0 : index
    %c0_4 = arith.constant 0 : index
    %c0_5 = arith.constant 0 : index
    %8 = vector.load %arg2[%c0, %c0_4, %c0_5] : memref<1x256x1xi32, #tpu.memory_space<vmem>>, vector<1x256x1xi32>
    %9 = vector.shape_cast %8 : vector<1x256x1xi32> to vector<256x1xi32>
    %c0_6 = arith.constant 0 : index
    %c0_7 = arith.constant 0 : index
    %c0_8 = arith.constant 0 : index
    %10 = vector.load %arg3[%c0_6, %c0_7, %c0_8] : memref<1x256x1xi32, #tpu.memory_space<vmem>>, vector<1x256x1xi32>
    %11 = vector.shape_cast %10 : vector<1x256x1xi32> to vector<256x1xi32>
    %c0_9 = arith.constant 0 : index
    %c0_10 = arith.constant 0 : index
    %c0_11 = arith.constant 0 : index
    %12 = vector.load %arg4[%c0_9, %c0_10, %c0_11] : memref<1x1x256xi32, #tpu.memory_space<vmem>>, vector<1x1x256xi32>
    %13 = vector.shape_cast %12 : vector<1x1x256xi32> to vector<1x256xi32>
    %14 = tpu.iota {dimensions = array<i32: 1>} : vector<256x8xi32>
    %15 = vector.broadcast %11 : vector<256x1xi32> to vector<256x8xi32>
    %16 = arith.cmpi eq, %14, %15 : vector<256x8xi32>
    %cst = arith.constant 1.000000e+00 : f32
    %cst_12 = arith.constant 0.000000e+00 : f32
    %17 = vector.broadcast %cst : f32 to vector<256x8xf32>
    %18 = vector.broadcast %cst_12 : f32 to vector<256x8xf32>
    %19 = arith.select %16, %17, %18 : vector<256x8xi1>, vector<256x8xf32>
    %20 = vector.broadcast %9 : vector<256x1xi32> to vector<256x8xi32>
    %21 = arith.cmpi eq, %14, %20 : vector<256x8xi32>
    %cst_13 = arith.constant 1.000000e+00 : f32
    %cst_14 = arith.constant 0.000000e+00 : f32
    %22 = vector.broadcast %cst_13 : f32 to vector<256x8xf32>
    %23 = vector.broadcast %cst_14 : f32 to vector<256x8xf32>
    %24 = arith.select %21, %22, %23 : vector<256x8xi1>, vector<256x8xf32>
    %25 = arith.subf %24, %19 : vector<256x8xf32>
    %c0_15 = arith.constant 0 : index
    %c0_16 = arith.constant 0 : index
    %26 = vector.load %arg15[%c0_15, %c0_16] : memref<8x128xf32, #tpu.memory_space<vmem>>, vector<8x128xf32>
    %cst_17 = arith.constant dense<0.000000e+00> : vector<256x128xf32>
    %27 = tpu.matmul %19, %26, %cst_17 {dimension_numbers = #tpu.dot_dimension_numbers<[1], [0], [0], [1], [0, 0, 1, 1], [], []>} : vector<256x8xf32>, vector<8x128xf32>, vector<256x128xf32> -> vector<256x128xf32>
    %cst_18 = arith.constant dense<0.000000e+00> : vector<256x128xf32>
    %28 = tpu.matmul %25, %26, %cst_18 {dimension_numbers = #tpu.dot_dimension_numbers<[1], [0], [0], [1], [0, 0, 1, 1], [], []>} : vector<256x8xf32>, vector<8x128xf32>, vector<256x128xf32> -> vector<256x128xf32>
    %c64_i32 = arith.constant 64 : i32
    %29 = tpu.dynamic_rotate %28 by %c64_i32 dim 1 : vector<256x128xf32>, i32 -> vector<256x128xf32>
    %30 = arith.addf %27, %29 : vector<256x128xf32>
    %c0_19 = arith.constant 0 : index
    %c0_20 = arith.constant 0 : index
    %c0_21 = arith.constant 0 : index
    %31 = vector.load %arg7[%c0_19, %c0_20, %c0_21] : memref<1x128x32xf32, #tpu.memory_space<vmem>>, vector<1x128x32xf32>
    %32 = vector.shape_cast %31 : vector<1x128x32xf32> to vector<128x32xf32>
    %cst_22 = arith.constant dense<0.000000e+00> : vector<256x32xf32>
    %33 = tpu.matmul %30, %32, %cst_22 {dimension_numbers = #tpu.dot_dimension_numbers<[1], [0], [0], [1], [0, 0, 1, 1], [], []>} : vector<256x128xf32>, vector<128x32xf32>, vector<256x32xf32> -> vector<256x32xf32>
    %c0_23 = arith.constant 0 : index
    %c0_24 = arith.constant 0 : index
    %c0_25 = arith.constant 0 : index
    %34 = vector.load %arg10[%c0_23, %c0_24, %c0_25] : memref<1x1x32xf32, #tpu.memory_space<vmem>>, vector<1x1x32xf32>
    %35 = vector.shape_cast %34 : vector<1x1x32xf32> to vector<1x32xf32>
    %36 = vector.broadcast %35 : vector<1x32xf32> to vector<256x32xf32>
    %37 = arith.addf %33, %36 : vector<256x32xf32>
    %cst_26 = arith.constant 0.000000e+00 : f32
    %38 = vector.broadcast %cst_26 : f32 to vector<256x32xf32>
    %39 = arith.maximumf %37, %38 : vector<256x32xf32>
    %c0_27 = arith.constant 0 : index
    %c0_28 = arith.constant 0 : index
    %c0_29 = arith.constant 0 : index
    %40 = vector.load %arg8[%c0_27, %c0_28, %c0_29] : memref<1x32x32xf32, #tpu.memory_space<vmem>>, vector<1x32x32xf32>
    %41 = vector.shape_cast %40 : vector<1x32x32xf32> to vector<32x32xf32>
    %cst_30 = arith.constant dense<0.000000e+00> : vector<256x32xf32>
    %42 = tpu.matmul %39, %41, %cst_30 {dimension_numbers = #tpu.dot_dimension_numbers<[1], [0], [0], [1], [0, 0, 1, 1], [], []>} : vector<256x32xf32>, vector<32x32xf32>, vector<256x32xf32> -> vector<256x32xf32>
    %c0_31 = arith.constant 0 : index
    %c0_32 = arith.constant 0 : index
    %c0_33 = arith.constant 0 : index
    %43 = vector.load %arg11[%c0_31, %c0_32, %c0_33] : memref<1x1x32xf32, #tpu.memory_space<vmem>>, vector<1x1x32xf32>
    %44 = vector.shape_cast %43 : vector<1x1x32xf32> to vector<1x32xf32>
    %45 = vector.broadcast %44 : vector<1x32xf32> to vector<256x32xf32>
    %46 = arith.addf %42, %45 : vector<256x32xf32>
    %cst_34 = arith.constant 0.000000e+00 : f32
    %47 = vector.broadcast %cst_34 : f32 to vector<256x32xf32>
    %48 = arith.maximumf %46, %47 : vector<256x32xf32>
    %c0_35 = arith.constant 0 : index
    %c0_36 = arith.constant 0 : index
    %c0_37 = arith.constant 0 : index
    %49 = vector.load %arg9[%c0_35, %c0_36, %c0_37] : memref<1x32x128xf32, #tpu.memory_space<vmem>>, vector<1x32x128xf32>
    %50 = vector.shape_cast %49 : vector<1x32x128xf32> to vector<32x128xf32>
    %cst_38 = arith.constant dense<0.000000e+00> : vector<256x128xf32>
    %51 = tpu.matmul %48, %50, %cst_38 {dimension_numbers = #tpu.dot_dimension_numbers<[1], [0], [0], [1], [0, 0, 1, 1], [], []>} : vector<256x32xf32>, vector<32x128xf32>, vector<256x128xf32> -> vector<256x128xf32>
    %c0_39 = arith.constant 0 : index
    %c0_40 = arith.constant 0 : index
    %c0_41 = arith.constant 0 : index
    %52 = vector.load %arg12[%c0_39, %c0_40, %c0_41] : memref<1x1x128xf32, #tpu.memory_space<vmem>>, vector<1x1x128xf32>
    %53 = vector.shape_cast %52 : vector<1x1x128xf32> to vector<1x128xf32>
    %54 = vector.broadcast %53 : vector<1x128xf32> to vector<256x128xf32>
    %55 = arith.addf %51, %54 : vector<256x128xf32>
    %c0_i32_42 = arith.constant 0 : i32
    %56 = arith.cmpi eq, %arg0, %c0_i32_42 : i32
    %cst_43 = arith.constant 1.000000e+00 : f32
    %cst_44 = arith.constant 0.000000e+00 : f32
    %57 = arith.select %56, %cst_43, %cst_44 : f32
    %cst_45 = arith.constant 0.000000e+00 : f32
    %58 = vector.broadcast %cst_45 : f32 to vector<256x128xf32>
    %59 = arith.maximumf %55, %58 : vector<256x128xf32>
    %60 = vector.broadcast %57 : f32 to vector<256x128xf32>
    %61 = arith.mulf %60, %59 : vector<256x128xf32>
    %cst_46 = arith.constant 1.000000e+00 : f32
    %62 = arith.subf %cst_46, %57 : f32
    %63 = vector.broadcast %62 : f32 to vector<256x128xf32>
    %64 = arith.mulf %63, %55 : vector<256x128xf32>
    %65 = arith.addf %61, %64 : vector<256x128xf32>
    %66 = tpu.iota {dimensions = array<i32: 0>} : vector<8x256xi32>
    %67 = vector.broadcast %13 : vector<1x256xi32> to vector<8x256xi32>
    %68 = arith.cmpi eq, %66, %67 : vector<8x256xi32>
    %cst_47 = arith.constant 1.000000e+00 : f32
    %cst_48 = arith.constant 0.000000e+00 : f32
    %69 = vector.broadcast %cst_47 : f32 to vector<8x256xf32>
    %70 = vector.broadcast %cst_48 : f32 to vector<8x256xf32>
    %71 = arith.select %68, %69, %70 : vector<8x256xi1>, vector<8x256xf32>
    %c0_49 = arith.constant 0 : index
    %c0_50 = arith.constant 0 : index
    %72 = vector.load %arg14[%c0_49, %c0_50] : memref<8x128xf32, #tpu.memory_space<vmem>>, vector<8x128xf32>
    %cst_51 = arith.constant dense<0.000000e+00> : vector<8x128xf32>
    %73 = tpu.matmul %71, %65, %cst_51 {dimension_numbers = #tpu.dot_dimension_numbers<[1], [0], [0], [1], [0, 0, 1, 1], [], []>} : vector<8x256xf32>, vector<256x128xf32>, vector<8x128xf32> -> vector<8x128xf32>
    %74 = arith.addf %72, %73 : vector<8x128xf32>
    %c0_52 = arith.constant 0 : index
    %c0_53 = arith.constant 0 : index
    %75 = vector.load %arg14[%c0_52, %c0_53] : memref<8x128xf32, #tpu.memory_space<vmem>>, vector<8x128xf32>
    tpu.vector_store %arg14[%c0_52, %c0_53], %74 {strides = array<i32>} : memref<8x128xf32, #tpu.memory_space<vmem>>, vector<8x128xf32>,
    %c0_i32_54 = arith.constant 0 : i32
    %76 = arith.cmpi eq, %arg1, %c0_i32_54 : i32
    %c0_i32_55 = arith.constant 0 : i32
    %77 = arith.cmpi eq, %arg0, %c0_i32_55 : i32
    %78 = arith.andi %76, %77 : i1
    %79 = arith.extui %78 : i1 to i32
    %c0_i32_56 = arith.constant 0 : i32
    %80 = arith.cmpi ne, %79, %c0_i32_56 : i32
    scf.if %80 {
      %c0_59 = arith.constant 0 : index
      %c0_60 = arith.constant 0 : index
      %85 = vector.load %arg14[%c0_59, %c0_60] : memref<8x128xf32, #tpu.memory_space<vmem>>, vector<8x128xf32>
      %c0_61 = arith.constant 0 : index
      %c0_62 = arith.constant 0 : index
      %86 = vector.load %arg6[%c0_61, %c0_62] : memref<8x1xf32, #tpu.memory_space<vmem>>, vector<8x1xf32>
      %87 = vector.broadcast %86 : vector<8x1xf32> to vector<8x128xf32>
      %88 = arith.mulf %85, %87 : vector<8x128xf32>
      %c0_63 = arith.constant 0 : index
      %c0_64 = arith.constant 0 : index
      %89 = vector.load %arg15[%c0_63, %c0_64] : memref<8x128xf32, #tpu.memory_space<vmem>>, vector<8x128xf32>
      tpu.vector_store %arg15[%c0_63, %c0_64], %88 {strides = array<i32>} : memref<8x128xf32, #tpu.memory_space<vmem>>, vector<8x128xf32>,
    } else {
    }
    %c1_i32 = arith.constant 1 : i32
    %81 = arith.cmpi eq, %arg0, %c1_i32 : i32
    %82 = arith.andi %76, %81 : i1
    %83 = arith.extui %82 : i1 to i32
    %cst_57 = arith.constant 0.000000e+00 : f32
    %c0_i32_58 = arith.constant 0 : i32
    %84 = arith.cmpi ne, %83, %c0_i32_58 : i32
    scf.if %84 {
      %c0_59 = arith.constant 0 : index
      %c0_60 = arith.constant 0 : index
      %85 = vector.load %arg14[%c0_59, %c0_60] : memref<8x128xf32, #tpu.memory_space<vmem>>, vector<8x128xf32>
      %c0_61 = arith.constant 0 : index
      %c0_62 = arith.constant 0 : index
      %86 = vector.load %arg6[%c0_61, %c0_62] : memref<8x1xf32, #tpu.memory_space<vmem>>, vector<8x1xf32>
      %87 = vector.broadcast %86 : vector<8x1xf32> to vector<8x128xf32>
      %88 = arith.mulf %85, %87 : vector<8x128xf32>
      %89 = tpu.iota {dimensions = array<i32: 1>} : vector<8x128xi32>
      %c0_i32_63 = arith.constant 0 : i32
      %90 = vector.broadcast %c0_i32_63 : i32 to vector<8x128xi32>
      %91 = arith.cmpi eq, %89, %90 : vector<8x128xi32>
      %92 = vector.broadcast %cst_57 : f32 to vector<8x128xf32>
      %93 = arith.maximumf %88, %92 : vector<8x128xf32>
      %94 = arith.select %91, %93, %88 : vector<8x128xi1>, vector<8x128xf32>
      %c0_64 = arith.constant 0 : index
      %c0_65 = arith.constant 0 : index
      %95 = vector.load %arg13[%c0_64, %c0_65] : memref<8x128xf32, #tpu.memory_space<vmem>>, vector<8x128xf32>
      tpu.vector_store %arg13[%c0_64, %c0_65], %94 {strides = array<i32>} : memref<8x128xf32, #tpu.memory_space<vmem>>, vector<8x128xf32>,
    } else {
    }
    return
  }
  func.func @transform_0(%arg0: i32, %arg1: i32) -> (i32, i32, i32) {
    %c0_i32 = arith.constant 0 : i32
    %c0_i32_0 = arith.constant 0 : i32
    %c0_i32_1 = arith.constant 0 : i32
    return %arg1, %c0_i32, %c0_i32_0 : i32, i32, i32
  }
  func.func @transform_1(%arg0: i32, %arg1: i32) -> (i32, i32, i32) {
    %c0_i32 = arith.constant 0 : i32
    %c0_i32_0 = arith.constant 0 : i32
    %c0_i32_1 = arith.constant 0 : i32
    return %arg1, %c0_i32, %c0_i32_0 : i32, i32, i32
  }
  func.func @transform_2(%arg0: i32, %arg1: i32) -> (i32, i32, i32) {
    %c0_i32 = arith.constant 0 : i32
    %c0_i32_0 = arith.constant 0 : i32
    %c0_i32_1 = arith.constant 0 : i32
    return %arg1, %c0_i32, %c0_i32_0 : i32, i32, i32
  }
  func.func @transform_3(%arg0: i32, %arg1: i32) -> (i32, i32) {
    %c0_i32 = arith.constant 0 : i32
    %c0_i32_0 = arith.constant 0 : i32
    %c0_i32_1 = arith.constant 0 : i32
    return %c0_i32, %c0_i32_0 : i32, i32
  }
  func.func @transform_4(%arg0: i32, %arg1: i32) -> (i32, i32) {
    %c0_i32 = arith.constant 0 : i32
    %c0_i32_0 = arith.constant 0 : i32
    %c0_i32_1 = arith.constant 0 : i32
    return %c0_i32, %c0_i32_0 : i32, i32
  }
  func.func @transform_5(%arg0: i32, %arg1: i32) -> (i32, i32, i32) {
    %c0_i32 = arith.constant 0 : i32
    %c0_i32_0 = arith.constant 0 : i32
    %c0_i32_1 = arith.constant 0 : i32
    return %arg0, %c0_i32, %c0_i32_0 : i32, i32, i32
  }
  func.func @transform_6(%arg0: i32, %arg1: i32) -> (i32, i32, i32) {
    %c0_i32 = arith.constant 0 : i32
    %c0_i32_0 = arith.constant 0 : i32
    %c0_i32_1 = arith.constant 0 : i32
    return %arg0, %c0_i32, %c0_i32_0 : i32, i32, i32
  }
  func.func @transform_7(%arg0: i32, %arg1: i32) -> (i32, i32, i32) {
    %c0_i32 = arith.constant 0 : i32
    %c0_i32_0 = arith.constant 0 : i32
    %c0_i32_1 = arith.constant 0 : i32
    return %arg0, %c0_i32, %c0_i32_0 : i32, i32, i32
  }
  func.func @transform_8(%arg0: i32, %arg1: i32) -> (i32, i32, i32) {
    %c0_i32 = arith.constant 0 : i32
    %c0_i32_0 = arith.constant 0 : i32
    %c0_i32_1 = arith.constant 0 : i32
    return %arg0, %c0_i32, %c0_i32_0 : i32, i32, i32
  }
  func.func @transform_9(%arg0: i32, %arg1: i32) -> (i32, i32, i32) {
    %c0_i32 = arith.constant 0 : i32
    %c0_i32_0 = arith.constant 0 : i32
    %c0_i32_1 = arith.constant 0 : i32
    return %arg0, %c0_i32, %c0_i32_0 : i32, i32, i32
  }
  func.func @transform_10(%arg0: i32, %arg1: i32) -> (i32, i32, i32) {
    %c0_i32 = arith.constant 0 : i32
    %c0_i32_0 = arith.constant 0 : i32
    %c0_i32_1 = arith.constant 0 : i32
    return %arg0, %c0_i32, %c0_i32_0 : i32, i32, i32
  }
  func.func @transform_11(%arg0: i32, %arg1: i32) -> (i32, i32) {
    %c0_i32 = arith.constant 0 : i32
    %c0_i32_0 = arith.constant 0 : i32
    %c0_i32_1 = arith.constant 0 : i32
    return %c0_i32, %c0_i32_0 : i32, i32
  }
}

</mosaic_0001>

<bundles_post_ra>
// kernel: tpu_custom_call.1
= control target key start
LH: loop header
LB: loop body
LE: loop exit
PB: predicated region body
PF: predicated region fallthrough
CT: control target
= control target key end

     0   :  { %s3697_s0 = inlined_call_operand.vmem [shape: s32[1,256,1], index: 0, kind: input, shape index: {}]   ;;  %s3698_s1 = inlined_call_operand.vmem [shape: s32[1,256,1], index: 1, kind: input, shape index: {}]   ;;  %s3699_s2 = inlined_call_operand.vmem [shape: s32[1,1,256], index: 2, kind: input, shape index: {}]   ;;  %s3700_s3 = inlined_call_operand.vmem [shape: f32[8,128], index: 3, kind: input, shape index: {}]   ;;  %s3701_s4 = inlined_call_operand.vmem [shape: f32[8,1], index: 4, kind: input, shape index: {}]   ;;  %s3702_s5 = inlined_call_operand.vmem [shape: f32[2,128,32], index: 5, kind: input, shape index: {}]   ;;  %s3703_s6 = inlined_call_operand.vmem [shape: f32[2,32,32], index: 6, kind: input, shape index: {}]   ;;  %s3704_s7 = inlined_call_operand.vmem [shape: f32[2,32,128], index: 7, kind: input, shape index: {}]   ;;  %s3705_s8 = inlined_call_operand.vmem [shape: f32[2,1,32], index: 8, kind: input, shape index: {}]   ;;  %s3706_s9 = inlined_call_operand.vmem [shape: f32[2,1,32], index: 9, kind: input, shape index: {}]   ;;  %s3707_s10 = inlined_call_operand.vmem [shape: f32[2,1,128], index: 10, kind: input, shape index: {}]   ;;  %s3708_s11 = inlined_call_operand.hbm [shape: f32[8,128], index: 11, kind: output, shape index: {}]  }
   0x1   :  { %3710 = sst [smem:[#allocation9_spill]] %s3702_s5 }
   0x2   :  { %16 = vsyncpa [#allocation5], 0  ;;  %s2764_s17 = smov 0   ;;  %s2766_s18 = smov 0  }
   0x3   :  { %s2768_s19 = smov 0  }
   0x4 LB: > { %3711 = sst [smem:[#allocation7_spill]] %s2691_s18  ;;  %s34_s21 = sadd.s32 1, %s2691_s18  ;;  %s2695_s19 = sphi %s2768_s19, %s22_s19   ;;  %s2691_s18 = sphi %s2766_s18, %s3716_s18   ;;  %s2687_s17 = sphi %s2764_s17, %s3715_s17  }
   0x5   : > { %p36_p0 = scmp.ge.s32.totalorder %s34_s21, 2  ;;  %p2441_p1 = scmp.ge.s32.totalorder %s2695_s19, 1 }
   0x6   : > { %p418_p2 = scmp.lt.s32.totalorder %s2695_s19, 3 }
   0x7   : > { %s3718_s21 = smov (%p36_p0, %s34_s21), 0 }
   0x8   : > { %3712 = sst [smem:[#allocation8_spill]] %s3718_s21  ;;  %p419_p3 = pnand %p2441_p1, %p418_p2 }
   0x9   : > { %p500_p4 = scmp.lt.s32.totalorder (!%p419_p3), %s2687_s17, 1  ;;  %p524_p5 = scmp.eq.s32.totalorder (!%p419_p3), %s2687_s17, 0 }
   0xa   : > { %422 = sbr.rel (%p419_p3) target bundleno = 1459 (0x5b3), region = 64  ;;  %s3713_s5 = sld [smem:[#allocation9_spill]] (!%p419_p3) }
   0xf   : > { %s2788_s22 = scalar_select %p500_p4, %s2687_s17, 1  ;;  %v530_v0 = vld [vmem:[%s3700_s3] sm:$0xff] (%p524_p5) }
  0x10   : > { %529 = sbr.rel (!%p524_p5) target bundleno = 21 (0x15), region = 68  ;;  %531 = vst [vmem:[#allocation3] sm:$0xff] (%p524_p5), %v530_v0 }
  0x11   : > { %s2584_s23 = sshll.u32 %s2788_s22, 7  ;;  %s2585_s24 = sshll.u32 %s2788_s22, 5 }
  0x12   : > { %s2795_s27 = scalar_lea.vmem %s3713_s5, %s2584_s23  ;;  %s2800_s30 = scalar_lea.vmem %s3703_s6, %s2585_s24 }
  0x13   : > { %s2805_s14 = scalar_lea.vmem %s3704_s7, %s2585_s24  ;;  %s517_s20 = scalar_lea.vmem %s3705_s8, %s2788_s22 }
  0x14   : > { %s520_s25 = scalar_lea.vmem %s3706_s9, %s2788_s22  ;;  %s523_s5 = scalar_lea.vmem %s3707_s10, %s2788_s22 }
  0x15 PF: > { %v580_v1 = vld [vmem:[%s3698_s1 + $0x60] sm:$0xff]  ;;  %v579_v2 = vld [vmem:[%s3698_s1 + $0x58] sm:$0xff]  ;;  %v578_v3 = vld [vmem:[%s3698_s1 + $0x50] sm:$0xff]  ;;  %v2697_v4 = vmov 0   ;;  %v601_v51 = vlaneseq  ;;  %v2698_v61 = vmov 0.0   ;;  %vm956_vm2 = vcmask 64512  }
  0x16   : > { %2635 = vset.pattern.permute.xlu2 %v2697_v4  ;;  %2634 = vset.pattern.permute.xlu1 %v2697_v4  ;;  %v548_v5 = vld [vmem:[%s3697_s0 + $0x60] sm:$0xff]  ;;  %v547_v6 = vld [vmem:[%s3697_s0 + $0x58] sm:$0xff]  ;;  %v546_v7 = vld [vmem:[%s3697_s0 + $0x50] sm:$0xff]  ;;  %s2699_s26 = smov 64  }
  0x17   : > { %2633 = vset.pattern.permute.xlu0 %v2697_v4  ;;  %640 = vperm.xlu2 %2635, %v580_v1   ;;  %v582_v8 = vld [vmem:[%s3698_s1 + $0x70] sm:$0xff]  ;;  %v549_v9 = vld [vmem:[%s3697_s0 + $0x68] sm:$0xff]  ;;  %v536_v11 = vld [vmem:[%s3697_s0] sm:$0xff]  ;;  %v2965_v55 = vand.u32 127, %v601_v51 }
  0x18   : > { %637 = vperm.xlu1 %2634, %v579_v2   ;;  %634 = vperm.xlu0 %2633, %v578_v3   ;;  %v581_v10 = vld [vmem:[%s3698_s1 + $0x68] sm:$0xff]  ;;  %v568_v12 = vld [vmem:[%s3698_s1] sm:$0xff]  ;;  %v550_v13 = vld [vmem:[%s3697_s0 + $0x70] sm:$0xff] }
  0x19   : > { %v569_v14 = vld [vmem:[%s3698_s1 + $0x8] sm:$0xff]  ;;  %v551_v15 = vld [vmem:[%s3697_s0 + $0x78] sm:$0xff]  ;;  %v552_v17 = vld [vmem:[%s3697_s0 + $0x80] sm:$0xff] }
  0x1a   : > { %v583_v16 = vld [vmem:[%s3698_s1 + $0x78] sm:$0xff]  ;;  %v584_v18 = vld [vmem:[%s3698_s1 + $0x80] sm:$0xff]  ;;  %v537_v19 = vld [vmem:[%s3697_s0 + $0x8] sm:$0xff] }
  0x1b   : > { %v585_v20 = vld [vmem:[%s3698_s1 + $0x88] sm:$0xff]  ;;  %v538_v21 = vld [vmem:[%s3697_s0 + $0x10] sm:$0xff]  ;;  %v539_v23 = vld [vmem:[%s3697_s0 + $0x18] sm:$0xff] }
  0x1c   : > { %v570_v22 = vld [vmem:[%s3698_s1 + $0x10] sm:$0xff]  ;;  %v571_v24 = vld [vmem:[%s3698_s1 + $0x18] sm:$0xff]  ;;  %v553_v25 = vld [vmem:[%s3697_s0 + $0x88] sm:$0xff] }
  0x1d   : > { %v572_v26 = vld [vmem:[%s3698_s1 + $0x20] sm:$0xff]  ;;  %v554_v27 = vld [vmem:[%s3697_s0 + $0x90] sm:$0xff]  ;;  %v541_v29 = vld [vmem:[%s3697_s0 + $0x28] sm:$0xff] }
  0x1e   : > { %v586_v28 = vld [vmem:[%s3698_s1 + $0x90] sm:$0xff]  ;;  %v573_v30 = vld [vmem:[%s3698_s1 + $0x28] sm:$0xff]  ;;  %v540_v31 = vld [vmem:[%s3697_s0 + $0x20] sm:$0xff] }
  0x1f   : > { %800 = vperm.xlu2 %2635, %v548_v5   ;;  %v575_v32 = vld [vmem:[%s3698_s1 + $0x38] sm:$0xff]  ;;  %v542_v33 = vld [vmem:[%s3697_s0 + $0x30] sm:$0xff]  ;;  %v544_v35 = vld [vmem:[%s3697_s0 + $0x40] sm:$0xff] }
  0x20   : > { %797 = vperm.xlu1 %2634, %v547_v6   ;;  %794 = vperm.xlu0 %2633, %v546_v7   ;;  %v574_v34 = vld [vmem:[%s3698_s1 + $0x30] sm:$0xff]  ;;  %v576_v36 = vld [vmem:[%s3698_s1 + $0x40] sm:$0xff]  ;;  %v543_v37 = vld [vmem:[%s3697_s0 + $0x38] sm:$0xff] }
  0x21   : > { %v587_v39 = vld [vmem:[%s3698_s1 + $0x98] sm:$0xff]  ;;  %v545_v40 = vld [vmem:[%s3697_s0 + $0x48] sm:$0xff]  ;;  %v556_v43 = vld [vmem:[%s3697_s0 + $0xa0] sm:$0xff] }
  0x22   : > { %v577_v41 = vld [vmem:[%s3698_s1 + $0x48] sm:$0xff]  ;;  %v588_v45 = vld [vmem:[%s3698_s1 + $0xa0] sm:$0xff]  ;;  %v555_v46 = vld [vmem:[%s3697_s0 + $0x98] sm:$0xff] }
  0x23   : > { %v955_v42 = vld [vmem:[#allocation3] sm:$0xff]  ;;  %v590_v47 = vld [vmem:[%s3698_s1 + $0xb0] sm:$0xff]  ;;  %v559_v54 = vld [vmem:[%s3697_s0 + $0xb8] sm:$0xff] }
  0x24   : > { %2589 = vmatpush.msra.mxu1 %v955_v42  ;;  %1068 = vmatpush.msra.mxu0 %v955_v42  ;;  %v557_v48 = vld [vmem:[%s3697_s0 + $0xa8] sm:$0xff]  ;;  %v591_v56 = vld [vmem:[%s3698_s1 + $0xb8] sm:$0xff]  ;;  %v558_v57 = vld [vmem:[%s3697_s0 + $0xb0] sm:$0xff] }
  0x25   : > { %2590 = vmatpush.msra.mxu2 %v955_v42  ;;  %2591 = vmatpush.msra.mxu3 %v955_v42  ;;  %v589_v49 = vld [vmem:[%s3698_s1 + $0xa8] sm:$0xff] }
  0x26   : > { %1341 = vmatpush.msrb.mxu1 %v955_v42 }
  0x27   : > { %646 = vperm.xlu2 %2635, %v582_v8  }
  0x28   : > { %803 = vperm.xlu1 %2634, %v549_v9   ;;  %643 = vperm.xlu0 %2633, %v581_v10  }
  0x2f   : > { %764 = vperm.xlu2 %2635, %v536_v11  }
  0x30   : > { %604 = vperm.xlu1 %2634, %v568_v12   ;;  %806 = vperm.xlu0 %2633, %v550_v13  }
  0x37   : > { %607 = vperm.xlu2 %2635, %v569_v14  }
  0x38   : > { %809 = vperm.xlu1 %2634, %v551_v15   ;;  %649 = vperm.xlu0 %2633, %v583_v16  }
  0x3f   : > { %812 = vperm.xlu2 %2635, %v552_v17  }
  0x40   : > { %652 = vperm.xlu1 %2634, %v584_v18   ;;  %767 = vperm.xlu0 %2633, %v537_v19  }
  0x47   : > { %655 = vperm.xlu2 %2635, %v585_v20  }
  0x48   : > { %770 = vperm.xlu1 %2634, %v538_v21   ;;  %610 = vperm.xlu0 %2633, %v570_v22  }
  0x4f   : > { %773 = vperm.xlu2 %2635, %v539_v23  }
  0x50   : > { %613 = vperm.xlu1 %2634, %v571_v24   ;;  %815 = vperm.xlu0 %2633, %v553_v25  }
  0x57   : > { %616 = vperm.xlu2 %2635, %v572_v26  }
  0x58   : > { %818 = vperm.xlu1 %2634, %v554_v27   ;;  %658 = vperm.xlu0 %2633, %v586_v28  }
  0x5f   : > { %779 = vperm.xlu2 %2635, %v541_v29  }
  0x60   : > { %619 = vperm.xlu1 %2634, %v573_v30   ;;  %776 = vperm.xlu0 %2633, %v540_v31  }
  0x67   : > { %625 = vperm.xlu2 %2635, %v575_v32  }
  0x68   : > { %782 = vperm.xlu1 %2634, %v542_v33   ;;  %622 = vperm.xlu0 %2633, %v574_v34  }
  0x6f   : > { %788 = vperm.xlu2 %2635, %v544_v35  }
  0x70   : > { %628 = vperm.xlu1 %2634, %v576_v36   ;;  %785 = vperm.xlu0 %2633, %v543_v37  }
  0x71   : > { %v641_v38 = vpop.permute.xlu2 %640 }
  0x72   : > { %vm711_vm5 = vcmp.eq.s32.totalorder %v2965_v55, %v641_v38 }
  0x73   : > { %v2993_v7 = vsel %vm711_vm5, 1.0, %v2698_v61 }
  0x77   : > { %661 = vperm.xlu2 %2635, %v587_v39  }
  0x78   : > { %791 = vperm.xlu1 %2634, %v545_v40   ;;  %631 = vperm.xlu0 %2633, %v577_v41  }
  0x79   : > { %v801_v44 = vpop.permute.xlu2 %800 }
  0x7a   : > { %vm871_vm6 = vcmp.eq.s32.totalorder %v2965_v55, %v801_v44 }
  0x7b   : > { %v903_v8 = vsel %vm871_vm6, 1.0, %v2698_v61 }
  0x7c   : > { %v935_v13 = vsub.f32 %v903_v8, %v2993_v7 }
  0x7f   : > { %824 = vperm.xlu2 %2635, %v556_v43  }
  0x80   : > { %664 = vperm.xlu1 %2634, %v588_v45   ;;  %821 = vperm.xlu0 %2633, %v555_v46  }
  0x81   : > { %v2959_v50 = vpop.permute.xlu2 %646 }
  0x82   : > { %vm713_vm12 = vcmp.eq.s32.totalorder %v2965_v55, %v2959_v50 }
  0x83   : > { %v3020_v25 = vsel %vm713_vm12, 1.0, %v2698_v61 }
  0x87   : > { %670 = vperm.xlu2 %2635, %v590_v47  }
  0x88   : > { %827 = vperm.xlu1 %2634, %v557_v48   ;;  %667 = vperm.xlu0 %2633, %v589_v49  }
  0x89   : > { %v765_v58 = vpop.permute.xlu2 %764 }
  0x8a   : > { %v638_v52 = vpop.permute.xlu1 %637  ;;  %v635_v53 = vpop.permute.xlu0 %634  ;;  %vm859_vm7 = vcmp.eq.s32.totalorder %v2965_v55, %v765_v58 }
  0x8b   : > { %vm709_vm0 = vcmp.eq.s32.totalorder %v2965_v55, %v635_v53  ;;  %vm710_vm3 = vcmp.eq.s32.totalorder %v2965_v55, %v638_v52  ;;  %v891_v11 = vsel %vm859_vm7, 1.0, %v2698_v61 }
  0x8c   : > { %v2976_v62 = vsel %vm709_vm0, 1.0, %v2698_v61  ;;  %v2984_v1 = vsel %vm710_vm3, 1.0, %v2698_v61 }
  0x8f   : > { %833 = vperm.xlu2 %2635, %v559_v54  }
  0x90   : > { %673 = vperm.xlu1 %2634, %v591_v56   ;;  %830 = vperm.xlu0 %2633, %v558_v57  }
  0x91   : > { %v608_v5 = vpop.permute.xlu2 %607 }
  0x92   : > { %v798_v59 = vpop.permute.xlu1 %797  ;;  %v795_v60 = vpop.permute.xlu0 %794  ;;  %vm700_vm13 = vcmp.eq.s32.totalorder %v2965_v55, %v608_v5 }
  0x93   : > { %vm869_vm1 = vcmp.eq.s32.totalorder %v2965_v55, %v795_v60  ;;  %vm870_vm4 = vcmp.eq.s32.totalorder %v2965_v55, %v798_v59  ;;  %v3023_v26 = vsel %vm700_vm13, 1.0, %v2698_v61 }
  0x94   : > { %v901_v63 = vsel %vm869_vm1, 1.0, %v2698_v61  ;;  %v902_v2 = vsel %vm870_vm4, 1.0, %v2698_v61 }
  0x95   : > { %v933_v0 = vsub.f32 %v901_v63, %v2976_v62  ;;  %v934_v6 = vsub.f32 %v902_v2, %v2984_v1 }
  0x97   : > { %2459 = vmatmul.msk.f32.vlgmr.msra.gmra.mxu1 %vm956_vm2, %v933_v0 }
  0x99   : > { %v813_v14 = vpop.permute.xlu2 %812 }
  0x9a   : > { %v804_v3 = vpop.permute.xlu1 %803  ;;  %v644_v4 = vpop.permute.xlu0 %643  ;;  %vm875_vm5 = vcmp.eq.s32.totalorder %v2965_v55, %v813_v14 }
  0x9b   : > { %vm872_vm9 = vcmp.eq.s32.totalorder %v2965_v55, %v804_v3  ;;  %vm712_vm10 = vcmp.eq.s32.totalorder %v2965_v55, %v644_v4  ;;  %v907_v43 = vsel %vm875_vm5, 1.0, %v2698_v61 }
  0x9c   : > { %v904_v16 = vsel %vm872_vm9, 1.0, %v2698_v61  ;;  %v3009_v17 = vsel %vm712_vm10, 1.0, %v2698_v61 }
  0x9d   : > { %v936_v20 = vsub.f32 %v904_v16, %v3009_v17 }
  0x9f   : > { %2460 = vmatmul.msk.f32.gmra.mxu1 %vm956_vm2, %v934_v6 }
  0xa1   : > { %v656_v21 = vpop.permute.xlu2 %655 }
  0xa2   : > { %v605_v9 = vpop.permute.xlu1 %604  ;;  %v807_v10 = vpop.permute.xlu0 %806  ;;  %vm716_vm9 = vcmp.eq.s32.totalorder %v2965_v55, %v656_v21 }
  0xa3   : > { %vm699_vm8 = vcmp.eq.s32.totalorder %v2965_v55, %v605_v9  ;;  %vm873_vm11 = vcmp.eq.s32.totalorder %v2965_v55, %v807_v10  ;;  %v3066_v52 = vsel %vm716_vm9, 1.0, %v2698_v61 }
  0xa4   : > { %v2999_v12 = vsel %vm699_vm8, 1.0, %v2698_v61  ;;  %v905_v22 = vsel %vm873_vm11, 1.0, %v2698_v61 }
  0xa5   : > { %v923_v15 = vsub.f32 %v891_v11, %v2999_v12  ;;  %v937_v28 = vsub.f32 %v905_v22, %v3020_v25 }
  0xa7   : > { %2449 = vmatmul.msk.f32.vlgmr.msra.gmra.mxu0 %vm956_vm2, %v923_v15  ;;  %2461 = vmatmul.msk.f32.gmra.mxu1 %vm956_vm2, %v935_v13 }
  0xa9   : > { %v774_v30 = vpop.permute.xlu2 %773 }
  0xaa   : > { %v810_v18 = vpop.permute.xlu1 %809  ;;  %v650_v19 = vpop.permute.xlu0 %649  ;;  %vm862_vm6 = vcmp.eq.s32.totalorder %v2965_v55, %v774_v30 }
  0xab   : > { %vm874_vm15 = vcmp.eq.s32.totalorder %v2965_v55, %v810_v18  ;;  %vm714_vm0 = vcmp.eq.s32.totalorder %v2965_v55, %v650_v19  ;;  %v894_v44 = vsel %vm862_vm6, 1.0, %v2698_v61 }
  0xac   : > { %v906_v31 = vsel %vm874_vm15, 1.0, %v2698_v61  ;;  %v3034_v32 = vsel %vm714_vm0, 1.0, %v2698_v61 }
  0xad   : > { %v938_v37 = vsub.f32 %v906_v31, %v3034_v32 }
  0xaf   : > { %2462 = vmatmul.msk.f32.gmra.mxu1 %vm956_vm2, %v936_v20 }
  0xb1   : > { %v617_v42 = vpop.permute.xlu2 %616 }
  0xb2   : > { %v653_v23 = vpop.permute.xlu1 %652  ;;  %v768_v24 = vpop.permute.xlu0 %767  ;;  %vm703_vm12 = vcmp.eq.s32.totalorder %v2965_v55, %v617_v42 }
  0xb3   : > { %vm860_vm14 = vcmp.eq.s32.totalorder %v2965_v55, %v768_v24  ;;  %vm715_vm4 = vcmp.eq.s32.totalorder %v2965_v55, %v653_v23  ;;  %v3079_v60 = vsel %vm703_vm12, 1.0, %v2698_v61 }
  0xb4   : > { %v892_v27 = vsel %vm860_vm14, 1.0, %v2698_v61  ;;  %v3050_v39 = vsel %vm715_vm4, 1.0, %v2698_v61 }
  0xb5   : > { %v924_v29 = vsub.f32 %v892_v27, %v3023_v26  ;;  %v939_v46 = vsub.f32 %v907_v43, %v3050_v39 }
  0xb7   : > { %2450 = vmatmul.msk.f32.gmra.mxu0 %vm956_vm2, %v924_v29  ;;  %2463 = vmatmul.msk.f32.gmra.mxu1 %vm956_vm2, %v937_v28 }
  0xb9   : > { %v780_v53 = vpop.permute.xlu2 %779 }
  0xba   : > { %v771_v33 = vpop.permute.xlu1 %770  ;;  %v611_v34 = vpop.permute.xlu0 %610  ;;  %vm864_vm15 = vcmp.eq.s32.totalorder %v2965_v55, %v780_v53 }
  0xbb   : > { %vm861_vm1 = vcmp.eq.s32.totalorder %v2965_v55, %v771_v33  ;;  %vm701_vm3 = vcmp.eq.s32.totalorder %v2965_v55, %v611_v34  ;;  %v896_v8 = vsel %vm864_vm15, 1.0, %v2698_v61 }
  0xbc   : > { %v893_v35 = vsel %vm861_vm1, 1.0, %v2698_v61  ;;  %v3040_v36 = vsel %vm701_vm3, 1.0, %v2698_v61 }
  0xbd   : > { %v925_v38 = vsub.f32 %v893_v35, %v3040_v36 }
  0xbf   : > { %2451 = vmatmul.msk.f32.gmra.mxu0 %vm956_vm2, %v925_v38  ;;  %2464 = vmatmul.msk.f32.gmra.mxu1 %vm956_vm2, %v938_v37 }
  0xc1   : > { %v626_v3 = vpop.permute.xlu2 %625 }
  0xc2   : > { %v614_v40 = vpop.permute.xlu1 %613  ;;  %v816_v41 = vpop.permute.xlu0 %815  ;;  %vm706_vm4 = vcmp.eq.s32.totalorder %v2965_v55, %v626_v3  ;;  %v592_v3 = vld [vmem:[%s3698_s1 + $0xc0] sm:$0xff] }
  0xc3   : > { %vm702_vm7 = vcmp.eq.s32.totalorder %v2965_v55, %v614_v40  ;;  %vm876_vm8 = vcmp.eq.s32.totalorder %v2965_v55, %v816_v41  ;;  %v738_v20 = vsel %vm706_vm4, 1.0, %v2698_v61 }
  0xc4   : > { %v3056_v45 = vsel %vm702_vm7, 1.0, %v2698_v61  ;;  %v908_v48 = vsel %vm876_vm8, 1.0, %v2698_v61 }
  0xc5   : > { %v926_v47 = vsub.f32 %v894_v44, %v3056_v45  ;;  %v940_v54 = vsub.f32 %v908_v48, %v3066_v52 }
  0xc7   : > { %2452 = vmatmul.msk.f32.gmra.mxu0 %vm956_vm2, %v926_v47  ;;  %2465 = vmatmul.msk.f32.gmra.mxu1 %vm956_vm2, %v939_v46 }
  0xc9   : > { %v789_v10 = vpop.permute.xlu2 %788 }
  0xca   : > { %v819_v49 = vpop.permute.xlu1 %818  ;;  %v659_v50 = vpop.permute.xlu0 %658  ;;  %vm867_vm6 = vcmp.eq.s32.totalorder %v2965_v55, %v789_v10 }
  0xcb   : > { %vm877_vm10 = vcmp.eq.s32.totalorder %v2965_v55, %v819_v49  ;;  %vm717_vm11 = vcmp.eq.s32.totalorder %v2965_v55, %v659_v50  ;;  %v899_v27 = vsel %vm867_vm6, 1.0, %v2698_v61 }
  0xcc   : > { %v909_v56 = vsel %vm877_vm10, 1.0, %v2698_v61  ;;  %v3075_v57 = vsel %vm717_vm11, 1.0, %v2698_v61 }
  0xcd   : > { %v941_v0 = vsub.f32 %v909_v56, %v3075_v57 }
  0xcf   : > { %2466 = vmatmul.msk.f32.gmra.mxu1 %vm956_vm2, %v940_v54 }
  0xd1   : > { %v662_v21 = vpop.permute.xlu2 %661 }
  0xd2   : > { %v620_v58 = vpop.permute.xlu1 %619  ;;  %v777_v59 = vpop.permute.xlu0 %776  ;;  %vm718_vm7 = vcmp.eq.s32.totalorder %v2965_v55, %v662_v21  ;;  %v1454_v21 = vld [vmem:[%s2795_s27 + $0x78] sm:$0xff] }
  0xd3   : > { %vm863_vm13 = vcmp.eq.s32.totalorder %v2965_v55, %v777_v59  ;;  %vm704_vm14 = vcmp.eq.s32.totalorder %v2965_v55, %v620_v58  ;;  %v3120_v28 = vsel %vm718_vm7, 1.0, %v2698_v61  ;;  %1459 = vmatpush.msrb.mxu2 %v1454_v21 }
  0xd4   : > { %v895_v63 = vsel %vm863_vm13, 1.0, %v2698_v61  ;;  %v3089_v4 = vsel %vm704_vm14, 1.0, %v2698_v61 }
  0xd5   : > { %v927_v2 = vsub.f32 %v895_v63, %v3079_v60  ;;  %v928_v9 = vsub.f32 %v896_v8, %v3089_v4  ;;  %v594_v8 = vld [vmem:[%s3698_s1 + $0xd0] sm:$0xff] }
  0xd7   : > { %2453 = vmatmul.msk.f32.gmra.mxu0 %vm956_vm2, %v927_v2  ;;  %2467 = vmatmul.msk.f32.gmra.mxu1 %vm956_vm2, %v941_v0 }
  0xd9   : > { %v825_v33 = vpop.permute.xlu2 %824 }
  0xda   : > { %v783_v5 = vpop.permute.xlu1 %782  ;;  %v623_v6 = vpop.permute.xlu0 %622  ;;  %vm879_vm12 = vcmp.eq.s32.totalorder %v2965_v55, %v825_v33  ;;  %v1448_v33 = vld [vmem:[%s2795_s27 + $0x48] sm:$0xff] }
  0xdb   : > { %vm865_vm0 = vcmp.eq.s32.totalorder %v2965_v55, %v783_v5  ;;  %vm705_vm1 = vcmp.eq.s32.totalorder %v2965_v55, %v623_v6  ;;  %v911_v38 = vsel %vm879_vm12, 1.0, %v2698_v61  ;;  %v593_v5 = vld [vmem:[%s3698_s1 + $0xc8] sm:$0xff] }
  0xdc   : > { %v897_v11 = vsel %vm865_vm0, 1.0, %v2698_v61  ;;  %v3100_v13 = vsel %vm705_vm1, 1.0, %v2698_v61 }
  0xdd   : > { %v929_v16 = vsub.f32 %v897_v11, %v3100_v13  ;;  %v561_v11 = vld [vmem:[%s3697_s0 + $0xc8] sm:$0xff] }
  0xdf   : > { %2454 = vmatmul.msk.f32.gmra.mxu0 %vm956_vm2, %v928_v9  ;;  %2481 = vmatmul.msk.f32.vlgmr.msrb.gmra.mxu1 %vm956_vm2, %v2999_v12 }
  0xe2   : > { %v629_v14 = vpop.permute.xlu1 %628  ;;  %v786_v15 = vpop.permute.xlu0 %785 }
  0xe3   : > { %vm866_vm3 = vcmp.eq.s32.totalorder %v2965_v55, %v786_v15  ;;  %vm707_vm5 = vcmp.eq.s32.totalorder %v2965_v55, %v629_v14  ;;  %v562_v15 = vld [vmem:[%s3697_s0 + $0xd0] sm:$0xff] }
  0xe4   : > { %v898_v12 = vsel %vm866_vm3, 1.0, %v2698_v61  ;;  %v739_v23 = vsel %vm707_vm5, 1.0, %v2698_v61 }
  0xe5   : > { %v930_v22 = vsub.f32 %v898_v12, %v738_v20  ;;  %v931_v30 = vsub.f32 %v899_v27, %v739_v23  ;;  %v563_v12 = vld [vmem:[%s3697_s0 + $0xd8] sm:$0xff]  ;;  %v565_v27 = vld [vmem:[%s3697_s0 + $0xe8] sm:$0xff] }
  0xe7   : > { %2455 = vmatmul.msk.f32.gmra.mxu0 %vm956_vm2, %v929_v16  ;;  %2482 = vmatmul.msk.f32.gmra.mxu1 %vm956_vm2, %v3023_v26 }
  0xea   : > { %v792_v18 = vpop.permute.xlu1 %791  ;;  %v632_v19 = vpop.permute.xlu0 %631 }
  0xeb   : > { %vm868_vm9 = vcmp.eq.s32.totalorder %v2965_v55, %v792_v18  ;;  %vm708_vm10 = vcmp.eq.s32.totalorder %v2965_v55, %v632_v19  ;;  %v598_v19 = vld [vmem:[%s3698_s1 + $0xf0] sm:$0xff] }
  0xec   : > { %v900_v34 = vsel %vm868_vm9, 1.0, %v2698_v61  ;;  %v740_v35 = vsel %vm708_vm10, 1.0, %v2698_v61 }
  0xed   : > { %v932_v41 = vsub.f32 %v900_v34, %v740_v35  ;;  %v1447_v34 = vld [vmem:[%s2795_s27 + $0x40] sm:$0xff] }
  0xef   : > { %2456 = vmatmul.msk.f32.gmra.mxu0 %vm956_vm2, %v930_v22  ;;  %2483 = vmatmul.msk.f32.gmra.mxu1 %vm956_vm2, %v3040_v36 }
  0xf2   : > { %v665_v24 = vpop.permute.xlu1 %664  ;;  %v822_v26 = vpop.permute.xlu0 %821 }
  0xf3   : > { %vm878_vm8 = vcmp.eq.s32.totalorder %v2965_v55, %v822_v26  ;;  %vm719_vm11 = vcmp.eq.s32.totalorder %v2965_v55, %v665_v24  ;;  %v1451_v24 = vld [vmem:[%s2795_s27 + $0x60] sm:$0xff]  ;;  %v599_v26 = vld [vmem:[%s3698_s1 + $0xf8] sm:$0xff] }
  0xf4   : > { %v910_v29 = vsel %vm878_vm8, 1.0, %v2698_v61  ;;  %v3135_v36 = vsel %vm719_vm11, 1.0, %v2698_v61 }
  0xf5   : > { %v942_v31 = vsub.f32 %v910_v29, %v3120_v28  ;;  %v943_v42 = vsub.f32 %v911_v38, %v3135_v36  ;;  %v1450_v29 = vld [vmem:[%s2795_s27 + $0x58] sm:$0xff] }
  0xf7   : > { %2457 = vmatmul.msk.f32.gmra.mxu0 %vm956_vm2, %v931_v30  ;;  %2468 = vmatmul.msk.f32.vlgmr.msra.gmra.mxu2 %vm956_vm2, %v942_v31 }
  0xf8   : > { %2484 = vmatmul.msk.f32.gmra.mxu1 %vm956_vm2, %v3056_v45  ;;  %v671_v45 = vpop.permute.xlu2 %670 }
  0xf9   : > { %vm721_vm0 = vcmp.eq.s32.totalorder %v2965_v55, %v671_v45  ;;  %v1442_v45 = vld [vmem:[%s2795_s27 + $0x18] sm:$0xff] }
  0xfa   : > { %v668_v37 = vpop.permute.xlu0 %667  ;;  %v828_v40 = vpop.permute.xlu1 %827  ;;  %v3157_v49 = vsel %vm721_vm0, 1.0, %v2698_v61 }
  0xfb   : > { %vm880_vm13 = vcmp.eq.s32.totalorder %v2965_v55, %v828_v40  ;;  %vm720_vm14 = vcmp.eq.s32.totalorder %v2965_v55, %v668_v37  ;;  %v1446_v37 = vld [vmem:[%s2795_s27 + $0x38] sm:$0xff]  ;;  %v1445_v40 = vld [vmem:[%s2795_s27 + $0x30] sm:$0xff] }
  0xfc   : > { %v912_v43 = vsel %vm880_vm13, 1.0, %v2698_v61  ;;  %v3147_v44 = vsel %vm720_vm14, 1.0, %v2698_v61 }
  0xfd   : > { %v944_v47 = vsub.f32 %v912_v43, %v3147_v44  ;;  %v567_v43 = vld [vmem:[%s3697_s0 + $0xf8] sm:$0xff] }
  0xff   : > { %2458 = vmatmul.msk.f32.gmra.mxu0 %vm956_vm2, %v932_v41  ;;  %2469 = vmatmul.msk.f32.gmra.mxu2 %vm956_vm2, %v943_v42  ;;  %v1443_v42 = vld [vmem:[%s2795_s27 + $0x20] sm:$0xff] }
 0x100   : > { %2485 = vmatmul.msk.f32.gmra.mxu1 %vm956_vm2, %v3079_v60  ;;  %v834_v54 = vpop.permute.xlu2 %833 }
 0x101   : > { %vm882_vm3 = vcmp.eq.s32.totalorder %v2965_v55, %v834_v54 }
 0x102   : > { %v831_v46 = vpop.permute.xlu0 %830  ;;  %v674_v50 = vpop.permute.xlu1 %673  ;;  %v914_v58 = vsel %vm882_vm3, 1.0, %v2698_v61 }
 0x103   : > { %vm881_vm15 = vcmp.eq.s32.totalorder %v2965_v55, %v831_v46  ;;  %vm722_vm1 = vcmp.eq.s32.totalorder %v2965_v55, %v674_v50  ;;  %v1439_v50 = vld [vmem:[%s2795_s27] sm:$0xff] }
 0x104   : > { %v913_v48 = vsel %vm881_vm15, 1.0, %v2698_v61  ;;  %v3166_v56 = vsel %vm722_vm1, 1.0, %v2698_v61 }
 0x105   : > { %v945_v53 = vsub.f32 %v913_v48, %v3157_v49  ;;  %v946_v60 = vsub.f32 %v914_v58, %v3166_v56 }
 0x107   : > { %2470 = vmatmul.msk.f32.gmra.mxu2 %vm956_vm2, %v944_v47  ;;  %v1441_v47 = vld [vmem:[%s2795_s27 + $0x10] sm:$0xff] }
 0x108   : > { %2486 = vmatmul.msk.f32.gmra.mxu1 %vm956_vm2, %v3089_v4 }
 0x10f   : > { %2471 = vmatmul.msk.f32.gmra.mxu2 %vm956_vm2, %v945_v53 }
 0x110   : > { %2487 = vmatmul.msk.f32.gmra.mxu1 %vm956_vm2, %v3100_v13 }
 0x114   : > { %v3169_v59 = vpop.f32.mrf.mxu1 }
 0x117   : > { %2472 = vmatmul.msk.f32.gmra.mxu2 %vm956_vm2, %v946_v60 }
 0x118   : > { %2488 = vmatmul.msk.f32.gmra.mxu1 %vm956_vm2, %v738_v20  ;;  %v564_v20 = vld [vmem:[%s3697_s0 + $0xe0] sm:$0xff] }
 0x11c   : > { %v3174_v63 = vpop.f32.mrf.mxu1 }
 0x120   : > { %2489 = vmatmul.msk.f32.gmra.mxu1 %vm956_vm2, %v739_v23  ;;  %v1453_v23 = vld [vmem:[%s2795_s27 + $0x70] sm:$0xff] }
 0x121   : > { %1460 = vmatpush.msrb.mxu2 %v1453_v23 }
 0x124   : > { %v1070_v0 = vpop.f32.mrf.mxu0  ;;  %v3178_v2 = vpop.f32.mrf.mxu1 }
 0x125   : > { %1166 = vrot.lane.b32.xlu0 %v1070_v0, %s2699_s26 }
 0x128   : > { %2490 = vmatmul.msk.f32.gmra.mxu1 %vm956_vm2, %v740_v35  ;;  %v566_v35 = vld [vmem:[%s3697_s0 + $0xf0] sm:$0xff] }
 0x12c   : > { %v3186_v4 = vpop.f32.mrf.mxu1 }
 0x12d   : > { %676 = vperm.xlu0 %2633, %v592_v3  }
 0x130   : > { %2491 = vmatmul.msk.f32.gmra.mxu1 %vm956_vm2, %v2976_v62  ;;  %v560_v62 = vld [vmem:[%s3697_s0 + $0xc0] sm:$0xff] }
 0x134   : > { %v1073_v6 = vpop.f32.mrf.mxu0  ;;  %v3200_v9 = vpop.f32.mrf.mxu1 }
 0x135   : > { %679 = vperm.xlu0 %2633, %v593_v5   ;;  %1168 = vrot.lane.b32.xlu1 %v1073_v6, %s2699_s26 }
 0x138   : > { %2492 = vmatmul.msk.f32.gmra.mxu1 %vm956_vm2, %v2984_v1  ;;  %v595_v1 = vld [vmem:[%s3698_s1 + $0xd8] sm:$0xff] }
 0x13c   : > { %v1076_v10 = vpop.f32.mrf.mxu0  ;;  %v3211_v14 = vpop.f32.mrf.mxu1 }
 0x13d   : > { %682 = vperm.xlu0 %2633, %v594_v8   ;;  %836 = vperm.xlu1 %2634, %v560_v62  }
 0x13e   : > { %1170 = vrot.lane.b32.xlu2 %v1076_v10, %s2699_s26 }
 0x140   : > { %2493 = vmatmul.msk.f32.gmra.mxu1 %vm956_vm2, %v2993_v7  ;;  %v596_v7 = vld [vmem:[%s3698_s1 + $0xe0] sm:$0xff] }
 0x144   : > { %v1079_v13 = vpop.f32.mrf.mxu0  ;;  %v3222_v16 = vpop.f32.mrf.mxu1 }
 0x145   : > { %685 = vperm.xlu0 %2633, %v595_v1   ;;  %839 = vperm.xlu1 %2634, %v561_v11  }
 0x146   : > { %1172 = vrot.lane.b32.xlu2 %v1079_v13, %s2699_s26 }
 0x148   : > { %2494 = vmatmul.msk.f32.gmra.mxu1 %vm956_vm2, %v3009_v17  ;;  %v597_v17 = vld [vmem:[%s3698_s1 + $0xe8] sm:$0xff] }
 0x14d   : > { %688 = vperm.xlu0 %2633, %v596_v7   ;;  %842 = vperm.xlu1 %2634, %v562_v15  }
 0x150   : > { %2495 = vmatmul.msk.f32.gmra.mxu1 %vm956_vm2, %v3020_v25  ;;  %v3235_v25 = vpop.f32.mrf.mxu1 }
 0x154   : > { %v1082_v18 = vpop.f32.mrf.mxu0 }
 0x155   : > { %691 = vperm.xlu0 %2633, %v597_v17   ;;  %845 = vperm.xlu1 %2634, %v563_v12  }
 0x156   : > { %1174 = vrot.lane.b32.xlu2 %v1082_v18, %s2699_s26 }
 0x158   : > { %2496 = vmatmul.msk.f32.gmra.mxu1 %vm956_vm2, %v3034_v32  ;;  %v1452_v32 = vld [vmem:[%s2795_s27 + $0x68] sm:$0xff]  ;;  %v1124_v30 = vpop.f32.mrf.mxu1 }
 0x159   : > { %1461 = vmatpush.msrb.mxu2 %v1452_v32 }
 0x15b   : > { %1462 = vmatpush.msrb.mxu2 %v1451_v24 }
 0x15c   : > { %v1085_v22 = vpop.f32.mrf.mxu0 }
 0x15d   : > { %694 = vperm.xlu0 %2633, %v598_v19   ;;  %848 = vperm.xlu1 %2634, %v564_v20  }
 0x15e   : > { %1176 = vrot.lane.b32.xlu2 %v1085_v22, %s2699_s26  ;;  %1463 = vmatpush.msrb.mxu2 %v1450_v29 }
 0x160   : > { %2497 = vmatmul.msk.f32.gmra.mxu1 %vm956_vm2, %v3050_v39  ;;  %v1449_v39 = vld [vmem:[%s2795_s27 + $0x50] sm:$0xff]  ;;  %v1343_v41 = vpop.f32.mrf.mxu1 }
 0x161   : > { %1464 = vmatpush.msrb.mxu2 %v1449_v39 }
 0x163   : > { %1465 = vmatpush.msrb.mxu2 %v1448_v33 }
 0x164   : > { %v1088_v31 = vpop.f32.mrf.mxu0 }
 0x165   : > { %697 = vperm.xlu0 %2633, %v599_v26   ;;  %851 = vperm.xlu1 %2634, %v565_v27  }
 0x166   : > { %1178 = vrot.lane.b32.xlu2 %v1088_v31, %s2699_s26  ;;  %1466 = vmatpush.msrb.mxu2 %v1447_v34 }
 0x168   : > { %2498 = vmatmul.msk.f32.gmra.mxu1 %vm956_vm2, %v3066_v52  ;;  %1467 = vmatpush.msrb.mxu2 %v1446_v37  ;;  %v1444_v52 = vld [vmem:[%s2795_s27 + $0x28] sm:$0xff]  ;;  %v1346_v48 = vpop.f32.mrf.mxu1 }
 0x16a   : > { %1468 = vmatpush.msrb.mxu2 %v1445_v40 }
 0x16c   : > { %v1091_v38 = vpop.f32.mrf.mxu0  ;;  %1469 = vmatpush.msrb.mxu2 %v1444_v52 }
 0x16d   : > { %1188 = vrot.lane.b32.xlu0 %v3174_v63, %s2699_s26  ;;  %854 = vperm.xlu1 %2634, %v566_v35  }
 0x16e   : > { %1180 = vrot.lane.b32.xlu2 %v1091_v38, %s2699_s26  ;;  %1470 = vmatpush.msrb.mxu2 %v1443_v42 }
 0x170   : > { %2499 = vmatmul.msk.f32.gmra.mxu1 %vm956_vm2, %v3075_v57  ;;  %1471 = vmatpush.msrb.mxu2 %v1442_v45  ;;  %v1440_v57 = vld [vmem:[%s2795_s27 + $0x8] sm:$0xff]  ;;  %v1349_v58 = vpop.f32.mrf.mxu1 }
 0x172   : > { %1472 = vmatpush.msrb.mxu2 %v1441_v47 }
 0x174   : > { %v1094_v46 = vpop.f32.mrf.mxu0  ;;  %1473 = vmatpush.msrb.mxu2 %v1440_v57 }
 0x175   : > { %1194 = vrot.lane.b32.xlu0 %v3200_v9, %s2699_s26  ;;  %857 = vperm.xlu1 %2634, %v567_v43  }
 0x176   : > { %1182 = vrot.lane.b32.xlu2 %v1094_v46, %s2699_s26  ;;  %1474 = vmatpush.msrb.mxu2 %v1439_v50 }
 0x178   : > { %2500 = vmatmul.msk.f32.gmra.mxu1 %vm956_vm2, %v3120_v28  ;;  %v1352_v63 = vpop.f32.mrf.mxu1 }
 0x17a   : > { %v1127_v53 = vpop.f32.mrf.mxu2 }
 0x17c   : > { %v1097_v54 = vpop.f32.mrf.mxu0 }
 0x17d   : > { %1200 = vrot.lane.b32.xlu0 %v3235_v25, %s2699_s26  ;;  %1190 = vrot.lane.b32.xlu1 %v3178_v2, %s2699_s26 }
 0x17e   : > { %1184 = vrot.lane.b32.xlu2 %v1097_v54, %s2699_s26 }
 0x180   : > { %2501 = vmatmul.msk.f32.gmra.mxu1 %vm956_vm2, %v3135_v36  ;;  %v1355_v0 = vpop.f32.mrf.mxu1 }
 0x182   : > { %v1130_v60 = vpop.f32.mrf.mxu2 }
 0x185   : > { %1206 = vrot.lane.b32.xlu0 %v1130_v60, %s2699_s26  ;;  %1196 = vrot.lane.b32.xlu1 %v3211_v14, %s2699_s26 }
 0x186   : > { %1186 = vrot.lane.b32.xlu2 %v3169_v59, %s2699_s26 }
 0x188   : > { %2502 = vmatmul.msk.f32.gmra.mxu1 %vm956_vm2, %v3147_v44 }
 0x18a   : > { %v1133_v28 = vpop.f32.mrf.mxu2 }
 0x18d   : > { %1202 = vrot.lane.b32.xlu1 %v1124_v30, %s2699_s26 }
 0x18e   : > { %1192 = vrot.lane.b32.xlu2 %v3186_v4, %s2699_s26  ;;  %v1358_v4 = vpop.f32.mrf.mxu1 }
 0x190   : > { %2503 = vmatmul.msk.f32.gmra.mxu1 %vm956_vm2, %v3157_v49 }
 0x192   : > { %v1136_v36 = vpop.f32.mrf.mxu2 }
 0x195   : > { %1208 = vrot.lane.b32.xlu1 %v1133_v28, %s2699_s26 }
 0x196   : > { %1198 = vrot.lane.b32.xlu2 %v3222_v16, %s2699_s26  ;;  %v1361_v10 = vpop.f32.mrf.mxu1 }
 0x197   : > { %v1167_v59 = vpop.permute.xlu0 %1166 }
 0x198   : > { %2504 = vmatmul.msk.f32.gmra.mxu1 %vm956_vm2, %v3166_v56  ;;  %v1344_v44 = vadd.f32 %v1343_v41, %v1167_v59  ;;  %v1171_v3 = vpop.permute.xlu2 %1170 }
 0x199   : > { %v1350_v13 = vadd.f32 %v1349_v58, %v1171_v3 }
 0x19a   : > { %v1139_v2 = vpop.f32.mrf.mxu2  ;;  %1475 = vmatmul.f32.vlgmr.msrb.gmra.mxu2 %v1344_v44 }
 0x19b   : > { %1212 = vrot.lane.b32.xlu0 %v1139_v2, %s2699_s26 }
 0x19e   : > { %1204 = vrot.lane.b32.xlu2 %v1127_v53, %s2699_s26  ;;  %v1364_v17 = vpop.f32.mrf.mxu1 }
 0x19f   : > { %v677_v49 = vpop.permute.xlu0 %676 }
 0x1a0   : > { %vm723_vm4 = vcmp.eq.s32.totalorder %v2965_v55, %v677_v49  ;;  %v1173_v8 = vpop.permute.xlu2 %1172 }
 0x1a1   : > { %v755_v5 = vsel %vm723_vm4, 1.0, %v2698_v61  ;;  %v1353_v25 = vadd.f32 %v1352_v63, %v1173_v8 }
 0x1a2   : > { %2505 = vmatmul.msk.f32.gmra.mxu1 %vm956_vm2, %v755_v5 }
 0x1a6   : > { %1210 = vrot.lane.b32.xlu2 %v1136_v36, %s2699_s26  ;;  %v1367_v23 = vpop.f32.mrf.mxu1 }
 0x1a7   : > { %v680_v6 = vpop.permute.xlu0 %679  ;;  %v1169_v56 = vpop.permute.xlu1 %1168 }
 0x1a8   : > { %vm724_vm5 = vcmp.eq.s32.totalorder %v2965_v55, %v680_v6  ;;  %v1347_v62 = vadd.f32 %v1346_v48, %v1169_v56 }
 0x1a9   : > { %v756_v9 = vsel %vm724_vm5, 1.0, %v2698_v61 }
 0x1aa   : > { %2506 = vmatmul.msk.f32.gmra.mxu1 %vm956_vm2, %v756_v9  ;;  %1478 = vmatmul.f32.gmra.mxu2 %v1347_v62 }
 0x1ae   : > { %v1370_v34 = vpop.f32.mrf.mxu1 }
 0x1af   : > { %v683_v1 = vpop.permute.xlu0 %682  ;;  %v837_v11 = vpop.permute.xlu1 %836 }
 0x1b0   : > { %vm725_vm6 = vcmp.eq.s32.totalorder %v2965_v55, %v683_v1  ;;  %vm883_vm7 = vcmp.eq.s32.totalorder %v2965_v55, %v837_v11  ;;  %v1175_v14 = vpop.permute.xlu2 %1174  ;;  %v1607_v11 = vld [vmem:[%s2800_s30 + $0x18] sm:$0xff] }
 0x1b1   : > { %v757_v7 = vsel %vm725_vm6, 1.0, %v2698_v61  ;;  %v915_v15 = vsel %vm883_vm7, 1.0, %v2698_v61  ;;  %v1356_v26 = vadd.f32 %v1355_v0, %v1175_v14  ;;  %1721 = vmatpush.msrb.mxu3 %v1607_v11  ;;  %v1606_v14 = vld [vmem:[%s2800_s30 + $0x10] sm:$0xff] }
 0x1b2   : > { %v947_v16 = vsub.f32 %v915_v15, %v755_v5  ;;  %2507 = vmatmul.msk.f32.gmra.mxu1 %vm956_vm2, %v757_v7  ;;  %1481 = vmatmul.f32.gmra.mxu2 %v1350_v13  ;;  %v1604_v15 = vld [vmem:[%s2800_s30] sm:$0xff] }
 0x1b3   : > { %1722 = vmatpush.msrb.mxu3 %v1606_v14 }
 0x1b4   : > { %2473 = vmatmul.msk.f32.vlgmr.msra.gmra.mxu3 %vm956_vm2, %v947_v16 }
 0x1b6   : > { %v1373_v47 = vpop.f32.mrf.mxu1 }
 0x1b7   : > { %v686_v12 = vpop.permute.xlu0 %685  ;;  %v840_v18 = vpop.permute.xlu1 %839 }
 0x1b8   : > { %vm726_vm8 = vcmp.eq.s32.totalorder %v2965_v55, %v686_v12  ;;  %vm884_vm9 = vcmp.eq.s32.totalorder %v2965_v55, %v840_v18  ;;  %v1177_v22 = vpop.permute.xlu2 %1176 }
 0x1b9   : > { %v758_v19 = vsel %vm726_vm8, 1.0, %v2698_v61  ;;  %v916_v20 = vsel %vm884_vm9, 1.0, %v2698_v61  ;;  %v1359_v35 = vadd.f32 %v1358_v4, %v1177_v22 }
 0x1ba   : > { %v948_v21 = vsub.f32 %v916_v20, %v756_v9  ;;  %2508 = vmatmul.msk.f32.gmra.mxu1 %vm956_vm2, %v758_v19  ;;  %1484 = vmatmul.f32.gmra.mxu2 %v1353_v25 }
 0x1bc   : > { %2474 = vmatmul.msk.f32.gmra.mxu3 %vm956_vm2, %v948_v21 }
 0x1be   : > { %v1376_v63 = vpop.f32.mrf.mxu1 }
 0x1bf   : > { %v689_v32 = vpop.permute.xlu0 %688  ;;  %v843_v24 = vpop.permute.xlu1 %842 }
 0x1c0   : > { %vm727_vm10 = vcmp.eq.s32.totalorder %v2965_v55, %v689_v32  ;;  %vm885_vm11 = vcmp.eq.s32.totalorder %v2965_v55, %v843_v24  ;;  %v1179_v31 = vpop.permute.xlu2 %1178 }
 0x1c1   : > { %v759_v27 = vsel %vm727_vm10, 1.0, %v2698_v61  ;;  %v917_v29 = vsel %vm885_vm11, 1.0, %v2698_v61  ;;  %v1362_v43 = vadd.f32 %v1361_v10, %v1179_v31 }
 0x1c2   : > { %v949_v30 = vsub.f32 %v917_v29, %v757_v7  ;;  %2509 = vmatmul.msk.f32.gmra.mxu1 %vm956_vm2, %v759_v27  ;;  %1487 = vmatmul.f32.gmra.mxu2 %v1356_v26 }
 0x1c4   : > { %2475 = vmatmul.msk.f32.gmra.mxu3 %vm956_vm2, %v949_v30 }
 0x1c6   : > { %v1379_v3 = vpop.f32.mrf.mxu1 }
 0x1c7   : > { %v692_v39 = vpop.permute.xlu0 %691  ;;  %v846_v33 = vpop.permute.xlu1 %845 }
 0x1c8   : > { %vm728_vm12 = vcmp.eq.s32.totalorder %v2965_v55, %v692_v39  ;;  %vm886_vm13 = vcmp.eq.s32.totalorder %v2965_v55, %v846_v33  ;;  %v1181_v41 = vpop.permute.xlu2 %1180 }
 0x1c9   : > { %v760_v37 = vsel %vm728_vm12, 1.0, %v2698_v61  ;;  %v918_v38 = vsel %vm886_vm13, 1.0, %v2698_v61  ;;  %v1365_v53 = vadd.f32 %v1364_v17, %v1181_v41 }
 0x1ca   : > { %v950_v40 = vsub.f32 %v918_v38, %v758_v19  ;;  %2510 = vmatmul.msk.f32.gmra.mxu1 %vm956_vm2, %v760_v37  ;;  %1490 = vmatmul.f32.gmra.mxu2 %v1359_v35 }
 0x1cc   : > { %2476 = vmatmul.msk.f32.gmra.mxu3 %vm956_vm2, %v950_v40 }
 0x1ce   : > { %v1382_v8 = vpop.f32.mrf.mxu1 }
 0x1cf   : > { %v695_v52 = vpop.permute.xlu0 %694  ;;  %v849_v42 = vpop.permute.xlu1 %848 }
 0x1d0   : > { %vm729_vm14 = vcmp.eq.s32.totalorder %v2965_v55, %v695_v52  ;;  %vm887_vm15 = vcmp.eq.s32.totalorder %v2965_v55, %v849_v42  ;;  %v1183_v54 = vpop.permute.xlu2 %1182 }
 0x1d1   : > { %v761_v45 = vsel %vm729_vm14, 1.0, %v2698_v61  ;;  %v919_v46 = vsel %vm887_vm15, 1.0, %v2698_v61  ;;  %v1368_v0 = vadd.f32 %v1367_v23, %v1183_v54  ;;  %v3371_v23 = vld [vmem:[%s517_s20] ss:$0 sm:$0xff] }
 0x1d2   : > { %v951_v57 = vsub.f32 %v919_v46, %v759_v27  ;;  %2511 = vmatmul.msk.f32.gmra.mxu1 %vm956_vm2, %v761_v45  ;;  %1493 = vmatmul.f32.gmra.mxu2 %v1362_v43 }
 0x1d4   : > { %2477 = vmatmul.msk.f32.gmra.mxu3 %vm956_vm2, %v951_v57 }
 0x1d6   : > { %v1385_v1 = vpop.f32.mrf.mxu1 }
 0x1d7   : > { %v698_v48 = vpop.permute.xlu0 %697  ;;  %v852_v50 = vpop.permute.xlu1 %851 }
 0x1d8   : > { %vm730_vm0 = vcmp.eq.s32.totalorder %v2965_v55, %v698_v48  ;;  %vm888_vm1 = vcmp.eq.s32.totalorder %v2965_v55, %v852_v50  ;;  %v1185_v2 = vpop.permute.xlu2 %1184 }
 0x1d9   : > { %v762_v58 = vsel %vm730_vm0, 1.0, %v2698_v61  ;;  %v920_v60 = vsel %vm888_vm1, 1.0, %v2698_v61  ;;  %v1371_v4 = vadd.f32 %v1370_v34, %v1185_v2 }
 0x1da   : > { %v952_v28 = vsub.f32 %v920_v60, %v760_v37  ;;  %2512 = vmatmul.msk.f32.gmra.mxu1 %vm956_vm2, %v762_v58  ;;  %1496 = vmatmul.f32.gmra.mxu2 %v1365_v53 }
 0x1dc   : > { %2478 = vmatmul.msk.f32.gmra.mxu3 %vm956_vm2, %v952_v28 }
 0x1de   : > { %v1388_v16 = vpop.f32.mrf.mxu1 }
 0x1df   : > { %v855_v36 = vpop.permute.xlu1 %854  ;;  %v1189_v9 = vpop.permute.xlu0 %1188 }
 0x1e0   : > { %vm889_vm3 = vcmp.eq.s32.totalorder %v2965_v55, %v855_v36  ;;  %v1187_v56 = vpop.permute.xlu2 %1186  ;;  %v1377_v10 = vadd.f32 %v1376_v63, %v1189_v9 }
 0x1e1   : > { %v921_v59 = vsel %vm889_vm3, 1.0, %v2698_v61  ;;  %v1374_v62 = vadd.f32 %v1373_v47, %v1187_v56 }
 0x1e2   : > { %v953_v44 = vsub.f32 %v921_v59, %v761_v45  ;;  %1499 = vmatmul.f32.gmra.mxu2 %v1368_v0 }
 0x1e4   : > { %2479 = vmatmul.msk.f32.gmra.mxu3 %vm956_vm2, %v953_v44 }
 0x1e6   : > { %v1391_v25 = vpop.f32.mrf.mxu1 }
 0x1e7   : > { %v858_v49 = vpop.permute.xlu1 %857  ;;  %v1195_v18 = vpop.permute.xlu0 %1194 }
 0x1e8   : > { %vm890_vm4 = vcmp.eq.s32.totalorder %v2965_v55, %v858_v49  ;;  %v1193_v17 = vpop.permute.xlu2 %1192  ;;  %v1386_v19 = vadd.f32 %v1385_v1, %v1195_v18 }
 0x1e9   : > { %v922_v5 = vsel %vm890_vm4, 1.0, %v2698_v61  ;;  %v1605_v61 = vld [vmem:[%s2800_s30 + $0x8] sm:$0xff]  ;;  %v1383_v12 = vadd.f32 %v1382_v8, %v1193_v17 }
 0x1ea   : > { %v954_v6 = vsub.f32 %v922_v5, %v762_v58  ;;  %1502 = vmatmul.f32.gmra.mxu2 %v1371_v4  ;;  %1723 = vmatpush.msrb.mxu3 %v1605_v61 }
 0x1ec   : > { %2480 = vmatmul.msk.f32.gmra.mxu3 %vm956_vm2, %v954_v6  ;;  %vm1612_vm2 = vcmask 261120  }
 0x1ed   : > { %1724 = vmatpush.msrb.mxu3 %v1604_v15 }
 0x1ee   : > { %v1394_v21 = vpop.f32.mrf.mxu1 }
 0x1ef   : > { %v1191_v13 = vpop.permute.xlu1 %1190  ;;  %v1201_v31 = vpop.permute.xlu0 %1200 }
 0x1f0   : > { %v1380_v7 = vadd.f32 %v1379_v3, %v1191_v13  ;;  %v1199_v32 = vpop.permute.xlu2 %1198  ;;  %v1395_v39 = vadd.f32 %v1394_v21, %v1201_v31 }
 0x1f1   : > { %v1392_v27 = vadd.f32 %v1391_v25, %v1199_v32 }
 0x1f2   : > { %1505 = vmatmul.f32.gmra.mxu2 %v1374_v62 }
 0x1f6   : > { %v1397_v30 = vpop.f32.mrf.mxu1 }
 0x1f7   : > { %v1197_v20 = vpop.permute.xlu1 %1196  ;;  %v1207_v50 = vpop.permute.xlu0 %1206 }
 0x1f8   : > { %v1389_v22 = vadd.f32 %v1388_v16, %v1197_v20  ;;  %v1205_v41 = vpop.permute.xlu2 %1204 }
 0x1fa   : > { %1508 = vmatmul.f32.gmra.mxu2 %v1377_v10 }
 0x1fe   : > { %v1400_v33 = vpop.f32.mrf.mxu1 }
 0x1ff   : > { %v1203_v34 = vpop.permute.xlu1 %1202  ;;  %v1401_v46 = vadd.f32 %v1400_v33, %v1205_v41 }
 0x200   : > { %v1398_v38 = vadd.f32 %v1397_v30, %v1203_v34  ;;  %v1211_v4 = vpop.permute.xlu2 %1210  ;;  %v1857_v30 = vld [vmem:[%s2805_s14 + $0x18] sm:$0xff]  ;;  %v1855_v34 = vld [vmem:[%s2805_s14 + $0x8] sm:$0xff] }
 0x201   : > { %1970 = vmatpush.msrb.mxu0 %v1857_v30  ;;  %2592 = vmatpush.msra.mxu2 %v1857_v30 }
 0x202   : > { %1511 = vmatmul.f32.gmra.mxu2 %v1380_v7 }
 0x206   : > { %v1403_v43 = vpop.f32.mrf.mxu1 }
 0x207   : > { %v1404_v54 = vadd.f32 %v1403_v43, %v1207_v50  ;;  %v1209_v28 = vpop.permute.xlu1 %1208 }
 0x20a   : > { %1514 = vmatmul.f32.gmra.mxu2 %v1383_v12 }
 0x20d   : > { %v1213_v10 = vpop.permute.xlu0 %1212 }
 0x20e   : > { %v1406_v60 = vpop.f32.mrf.mxu1 }
 0x20f   : > { %v1407_v59 = vadd.f32 %v1406_v60, %v1209_v28 }
 0x212   : > { %1517 = vmatmul.f32.gmra.mxu2 %v1386_v19 }
 0x216   : > { %v1409_v2 = vpop.f32.mrf.mxu1 }
 0x217   : > { %v1410_v6 = vadd.f32 %v1409_v2, %v1211_v4 }
 0x21a   : > { %1520 = vmatmul.f32.gmra.mxu2 %v1389_v22 }
 0x21d   : > { %v1476_v24 = vpop.f32.mrf.mxu2 }
 0x21e   : > { %v1477_v26 = vadd.f32 %v3371_v23, %v1476_v24  ;;  %v1412_v8 = vpop.f32.mrf.mxu1 }
 0x21f   : > { %v1413_v11 = vadd.f32 %v1412_v8, %v1213_v10 }
 0x220   : > { %v1572_v29 = vmax.f32 %v1477_v26, 0.0 }
 0x222   : > { %1523 = vmatmul.f32.gmra.mxu2 %v1392_v27  ;;  %2513 = vmatmul.msk.f32.vlgmr.msrb.gmra.mxu3 %vm1612_vm2, %v1572_v29 }
 0x22a   : > { %1526 = vmatmul.f32.gmra.mxu2 %v1395_v39  ;;  %v1856_v39 = vld [vmem:[%s2805_s14 + $0x10] sm:$0xff] }
 0x22b   : > { %1971 = vmatpush.msrb.mxu0 %v1856_v39  ;;  %2593 = vmatpush.msra.mxu2 %v1856_v39 }
 0x22d   : > { %v1479_v35 = vpop.f32.mrf.mxu2  ;;  %1972 = vmatpush.msrb.mxu0 %v1855_v34  ;;  %2594 = vmatpush.msra.mxu2 %v1855_v34 }
 0x22e   : > { %v1480_v37 = vadd.f32 %v3371_v23, %v1479_v35 }
 0x230   : > { %v1573_v40 = vmax.f32 %v1480_v37, 0.0  ;;  %v1854_v37 = vld [vmem:[%s2805_s14] sm:$0xff] }
 0x231   : > { %1973 = vmatpush.msrb.mxu0 %v1854_v37  ;;  %2595 = vmatpush.msra.mxu2 %v1854_v37 }
 0x232   : > { %1529 = vmatmul.f32.gmra.mxu2 %v1398_v38  ;;  %2514 = vmatmul.msk.f32.gmra.mxu3 %vm1612_vm2, %v1573_v40 }
 0x235   : > { %v1482_v52 = vpop.f32.mrf.mxu2 }
 0x236   : > { %v1483_v42 = vadd.f32 %v3371_v23, %v1482_v52 }
 0x237   : > { %v1142_v45 = vpop.f32.mrf.mxu3 }
 0x238   : > { %v1574_v47 = vmax.f32 %v1483_v42, 0.0  ;;  %1214 = vrot.lane.b32.xlu1 %v1142_v45, %s2699_s26  ;;  %v1415_v45 = vpop.f32.mrf.mxu1 }
 0x23a   : > { %1532 = vmatmul.f32.gmra.mxu2 %v1401_v46  ;;  %2515 = vmatmul.msk.f32.gmra.mxu3 %vm1612_vm2, %v1574_v47 }
 0x23d   : > { %v1485_v57 = vpop.f32.mrf.mxu2 }
 0x23e   : > { %v1486_v48 = vadd.f32 %v3371_v23, %v1485_v57 }
 0x23f   : > { %v1145_v53 = vpop.f32.mrf.mxu3 }
 0x240   : > { %v1575_v58 = vmax.f32 %v1486_v48, 0.0  ;;  %1216 = vrot.lane.b32.xlu2 %v1145_v53, %s2699_s26  ;;  %v3422_v48 = vld [vmem:[%s520_s25] ss:$0 sm:$0xff] }
 0x242   : > { %1535 = vmatmul.f32.gmra.mxu2 %v1404_v54  ;;  %2516 = vmatmul.msk.f32.gmra.mxu3 %vm1612_vm2, %v1575_v58  ;;  %v1418_v54 = vpop.f32.mrf.mxu1 }
 0x245   : > { %v1488_v63 = vpop.f32.mrf.mxu2 }
 0x246   : > { %v1489_v36 = vadd.f32 %v3371_v23, %v1488_v63 }
 0x247   : > { %v1148_v0 = vpop.f32.mrf.mxu3 }
 0x248   : > { %v1576_v44 = vmax.f32 %v1489_v36, 0.0  ;;  %1218 = vrot.lane.b32.xlu0 %v1148_v0, %s2699_s26 }
 0x24a   : > { %1538 = vmatmul.f32.gmra.mxu2 %v1407_v59  ;;  %2517 = vmatmul.msk.f32.gmra.mxu3 %vm1612_vm2, %v1576_v44  ;;  %v1421_v2 = vpop.f32.mrf.mxu1 }
 0x24d   : > { %v1491_v3 = vpop.f32.mrf.mxu2 }
 0x24e   : > { %v1492_v49 = vadd.f32 %v3371_v23, %v1491_v3 }
 0x24f   : > { %v1151_v5 = vpop.f32.mrf.mxu3 }
 0x250   : > { %v1577_v56 = vmax.f32 %v1492_v49, 0.0  ;;  %1220 = vrot.lane.b32.xlu1 %v1151_v5, %s2699_s26 }
 0x252   : > { %1541 = vmatmul.f32.gmra.mxu2 %v1410_v6  ;;  %2518 = vmatmul.msk.f32.gmra.mxu3 %vm1612_vm2, %v1577_v56  ;;  %v1424_v10 = vpop.f32.mrf.mxu1 }
 0x255   : > { %v1494_v62 = vpop.f32.mrf.mxu2 }
 0x256   : > { %v1495_v9 = vadd.f32 %v3371_v23, %v1494_v62 }
 0x257   : > { %v1154_v1 = vpop.f32.mrf.mxu3 }
 0x258   : > { %v1578_v13 = vmax.f32 %v1495_v9, 0.0  ;;  %1222 = vrot.lane.b32.xlu2 %v1154_v1, %s2699_s26 }
 0x25a   : > { %1544 = vmatmul.f32.gmra.mxu2 %v1413_v11  ;;  %2519 = vmatmul.msk.f32.gmra.mxu3 %vm1612_vm2, %v1578_v13 }
 0x25d   : > { %v1497_v14 = vpop.f32.mrf.mxu2 }
 0x25e   : > { %v1498_v61 = vadd.f32 %v3371_v23, %v1497_v14 }
 0x25f   : > { %v1157_v7 = vpop.f32.mrf.mxu3 }
 0x260   : > { %v1579_v15 = vmax.f32 %v1498_v61, 0.0  ;;  %1224 = vrot.lane.b32.xlu0 %v1157_v7, %s2699_s26 }
 0x262   : > { %2520 = vmatmul.msk.f32.gmra.mxu3 %vm1612_vm2, %v1579_v15 }
 0x265   : > { %v1500_v16 = vpop.f32.mrf.mxu2 }
 0x266   : > { %v1501_v17 = vadd.f32 %v3371_v23, %v1500_v16 }
 0x267   : > { %v1160_v12 = vpop.f32.mrf.mxu3 }
 0x268   : > { %v1580_v18 = vmax.f32 %v1501_v17, 0.0  ;;  %1226 = vrot.lane.b32.xlu1 %v1160_v12, %s2699_s26 }
 0x26a   : > { %2521 = vmatmul.msk.f32.gmra.mxu3 %vm1612_vm2, %v1580_v18  ;;  %v1427_v18 = vpop.f32.mrf.mxu1 }
 0x26d   : > { %v1503_v25 = vpop.f32.mrf.mxu2 }
 0x26e   : > { %v1504_v19 = vadd.f32 %v3371_v23, %v1503_v25 }
 0x26f   : > { %v1163_v20 = vpop.f32.mrf.mxu3 }
 0x270   : > { %v1581_v21 = vmax.f32 %v1504_v19, 0.0  ;;  %1228 = vrot.lane.b32.xlu2 %v1163_v20, %s2699_s26  ;;  %s2071_s26 = scalar_select %p524_p5, 1.0, 0.0 }
 0x272   : > { %2522 = vmatmul.msk.f32.gmra.mxu3 %vm1612_vm2, %v1581_v21  ;;  %v1430_v30 = vpop.f32.mrf.mxu1  ;;  %s2137_s12 = ssub.f32 1.0, %s2071_s26 }
 0x275   : > { %v1506_v22 = vpop.f32.mrf.mxu2 }
 0x276   : > { %v1507_v32 = vadd.f32 %v3371_v23, %v1506_v22 }
 0x278   : > { %v1582_v24 = vmax.f32 %v1507_v32, 0.0 }
 0x27a   : > { %2523 = vmatmul.msk.f32.gmra.mxu3 %vm1612_vm2, %v1582_v24 }
 0x27d   : > { %v1509_v26 = vpop.f32.mrf.mxu2 }
 0x27e   : > { %v1510_v27 = vadd.f32 %v3371_v23, %v1509_v26 }
 0x280   : > { %v1583_v29 = vmax.f32 %v1510_v27, 0.0 }
 0x282   : > { %2524 = vmatmul.msk.f32.gmra.mxu3 %vm1612_vm2, %v1583_v29 }
 0x285   : > { %v1512_v31 = vpop.f32.mrf.mxu2 }
 0x286   : > { %v1513_v33 = vadd.f32 %v3371_v23, %v1512_v31 }
 0x288   : > { %v1584_v35 = vmax.f32 %v1513_v33, 0.0 }
 0x28a   : > { %2525 = vmatmul.msk.f32.gmra.mxu3 %vm1612_vm2, %v1584_v35 }
 0x28d   : > { %v1515_v38 = vpop.f32.mrf.mxu2 }
 0x28e   : > { %v1516_v40 = vadd.f32 %v3371_v23, %v1515_v38 }
 0x290   : > { %v1585_v41 = vmax.f32 %v1516_v40, 0.0 }
 0x292   : > { %2526 = vmatmul.msk.f32.gmra.mxu3 %vm1612_vm2, %v1585_v41 }
 0x295   : > { %v1518_v52 = vpop.f32.mrf.mxu2 }
 0x296   : > { %v1519_v42 = vadd.f32 %v3371_v23, %v1518_v52 }
 0x298   : > { %v1586_v43 = vmax.f32 %v1519_v42, 0.0  ;;  %v1433_v42 = vpop.f32.mrf.mxu1 }
 0x29a   : > { %2527 = vmatmul.msk.f32.gmra.mxu3 %vm1612_vm2, %v1586_v43  ;;  %v1217_v3 = vpop.permute.xlu2 %1216 }
 0x29b   : > { %v1419_v4 = vadd.f32 %v1418_v54, %v1217_v3 }
 0x29d   : > { %v1521_v46 = vpop.f32.mrf.mxu2 }
 0x29e   : > { %v1522_v47 = vadd.f32 %v3371_v23, %v1521_v46 }
 0x2a0   : > { %v1587_v57 = vmax.f32 %v1522_v47, 0.0 }
 0x2a2   : > { %2528 = vmatmul.msk.f32.gmra.mxu3 %vm1612_vm2, %v1587_v57 }
 0x2a5   : > { %v1524_v50 = vpop.f32.mrf.mxu2  ;;  %v1726_v53 = vpop.f32.mrf.mxu3 }
 0x2a6   : > { %v1525_v58 = vadd.f32 %v3371_v23, %v1524_v50  ;;  %v1727_v60 = vadd.f32 %v3422_v48, %v1726_v53 }
 0x2a8   : > { %v1588_v28 = vmax.f32 %v1525_v58, 0.0  ;;  %v1822_v63 = vmax.f32 %v1727_v60, 0.0 }
 0x2aa   : > { %2545 = vmatmul.msk.f32.vlgmr.msrb.gmra.mxu0 %vm1612_vm2, %v1822_v63  ;;  %v1215_v36 = vpop.permute.xlu1 %1214  ;;  %2529 = vmatmul.msk.f32.gmra.mxu3 %vm1612_vm2, %v1588_v28  ;;  %v1436_v63 = vpop.f32.mrf.mxu1 }
 0x2ab   : > { %v1416_v0 = vadd.f32 %v1415_v45, %v1215_v36 }
 0x2ad   : > { %v1527_v59 = vpop.f32.mrf.mxu2  ;;  %1547 = vmatmul.f32.gmra.mxu2 %v1416_v0 }
 0x2ae   : > { %v1528_v44 = vadd.f32 %v3371_v23, %v1527_v59 }
 0x2b0   : > { %v1589_v49 = vmax.f32 %v1528_v44, 0.0 }
 0x2b2   : > { %2530 = vmatmul.msk.f32.gmra.mxu3 %vm1612_vm2, %v1589_v49  ;;  %v1223_v22 = vpop.permute.xlu2 %1222 }
 0x2b3   : > { %v1428_v26 = vadd.f32 %v1427_v18, %v1223_v22 }
 0x2b5   : > { %v1530_v5 = vpop.f32.mrf.mxu2  ;;  %1550 = vmatmul.f32.gmra.mxu2 %v1419_v4  ;;  %v1729_v6 = vpop.f32.mrf.mxu3 }
 0x2b6   : > { %v1531_v56 = vadd.f32 %v3371_v23, %v1530_v5  ;;  %v1730_v8 = vadd.f32 %v3422_v48, %v1729_v6 }
 0x2b8   : > { %v1590_v62 = vmax.f32 %v1531_v56, 0.0  ;;  %v1823_v9 = vmax.f32 %v1730_v8, 0.0 }
 0x2ba   : > { %v1219_v1 = vpop.permute.xlu0 %1218  ;;  %2531 = vmatmul.msk.f32.gmra.mxu3 %vm1612_vm2, %v1590_v62  ;;  %2546 = vmatmul.msk.f32.gmra.mxu0 %vm1612_vm2, %v1823_v9 }
 0x2bb   : > { %v1422_v11 = vadd.f32 %v1421_v2, %v1219_v1 }
 0x2bd   : > { %v1533_v13 = vpop.f32.mrf.mxu2  ;;  %1553 = vmatmul.f32.gmra.mxu2 %v1422_v11  ;;  %v1732_v14 = vpop.f32.mrf.mxu3 }
 0x2be   : > { %v1534_v61 = vadd.f32 %v3371_v23, %v1533_v13  ;;  %v1733_v7 = vadd.f32 %v3422_v48, %v1732_v14 }
 0x2c0   : > { %v1591_v15 = vmax.f32 %v1534_v61, 0.0  ;;  %v1824_v16 = vmax.f32 %v1733_v7, 0.0 }
 0x2c2   : > { %v1221_v17 = vpop.permute.xlu1 %1220  ;;  %2532 = vmatmul.msk.f32.gmra.mxu3 %vm1612_vm2, %v1591_v15  ;;  %2547 = vmatmul.msk.f32.gmra.mxu0 %vm1612_vm2, %v1824_v16 }
 0x2c3   : > { %v1425_v12 = vadd.f32 %v1424_v10, %v1221_v17 }
 0x2c5   : > { %v1536_v25 = vpop.f32.mrf.mxu2  ;;  %1556 = vmatmul.f32.gmra.mxu2 %v1425_v12  ;;  %v1735_v19 = vpop.f32.mrf.mxu3 }
 0x2c6   : > { %v1537_v20 = vadd.f32 %v3371_v23, %v1536_v25  ;;  %v1736_v21 = vadd.f32 %v3422_v48, %v1735_v19 }
 0x2c8   : > { %v1592_v32 = vmax.f32 %v1537_v20, 0.0  ;;  %v1825_v24 = vmax.f32 %v1736_v21, 0.0 }
 0x2ca   : > { %2533 = vmatmul.msk.f32.gmra.mxu3 %vm1612_vm2, %v1592_v32  ;;  %2548 = vmatmul.msk.f32.gmra.mxu0 %vm1612_vm2, %v1825_v24  ;;  %v1229_v58 = vpop.permute.xlu2 %1228 }
 0x2cb   : > { %v1437_v36 = vadd.f32 %v1436_v63, %v1229_v58 }
 0x2cd   : > { %v1539_v27 = vpop.f32.mrf.mxu2  ;;  %1559 = vmatmul.f32.gmra.mxu2 %v1428_v26  ;;  %v1738_v29 = vpop.f32.mrf.mxu3 }
 0x2ce   : > { %v1540_v31 = vadd.f32 %v3371_v23, %v1539_v27  ;;  %v1739_v39 = vadd.f32 %v3422_v48, %v1738_v29 }
 0x2d0   : > { %v1593_v33 = vmax.f32 %v1540_v31, 0.0  ;;  %v1826_v34 = vmax.f32 %v1739_v39, 0.0 }
 0x2d2   : > { %v1225_v35 = vpop.permute.xlu0 %1224  ;;  %2534 = vmatmul.msk.f32.gmra.mxu3 %vm1612_vm2, %v1593_v33  ;;  %2549 = vmatmul.msk.f32.gmra.mxu0 %vm1612_vm2, %v1826_v34 }
 0x2d3   : > { %v1431_v37 = vadd.f32 %v1430_v30, %v1225_v35 }
 0x2d5   : > { %v1542_v38 = vpop.f32.mrf.mxu2  ;;  %1562 = vmatmul.f32.gmra.mxu2 %v1431_v37  ;;  %v1741_v40 = vpop.f32.mrf.mxu3 }
 0x2d6   : > { %v1543_v41 = vadd.f32 %v3371_v23, %v1542_v38  ;;  %v1742_v52 = vadd.f32 %v3422_v48, %v1741_v40 }
 0x2d8   : > { %v1594_v43 = vmax.f32 %v1543_v41, 0.0  ;;  %v1827_v45 = vmax.f32 %v1742_v52, 0.0 }
 0x2da   : > { %v1227_v46 = vpop.permute.xlu1 %1226  ;;  %2535 = vmatmul.msk.f32.gmra.mxu3 %vm1612_vm2, %v1594_v43  ;;  %2550 = vmatmul.msk.f32.gmra.mxu0 %vm1612_vm2, %v1827_v45 }
 0x2db   : > { %v1434_v47 = vadd.f32 %v1433_v42, %v1227_v46 }
 0x2dd   : > { %v1545_v57 = vpop.f32.mrf.mxu2  ;;  %1565 = vmatmul.f32.gmra.mxu2 %v1434_v47  ;;  %v1744_v50 = vpop.f32.mrf.mxu3 }
 0x2de   : > { %v1546_v53 = vadd.f32 %v3371_v23, %v1545_v57  ;;  %v1745_v54 = vadd.f32 %v3422_v48, %v1744_v50 }
 0x2e0   : > { %v1595_v60 = vmax.f32 %v1546_v53, 0.0  ;;  %v1828_v28 = vmax.f32 %v1745_v54, 0.0 }
 0x2e2   : > { %2536 = vmatmul.msk.f32.gmra.mxu3 %vm1612_vm2, %v1595_v60  ;;  %2551 = vmatmul.msk.f32.gmra.mxu0 %vm1612_vm2, %v1828_v28 }
 0x2e5   : > { %1568 = vmatmul.f32.gmra.mxu2 %v1437_v36  ;;  %v1747_v0 = vpop.f32.mrf.mxu3 }
 0x2e6   : > { %v1748_v59 = vadd.f32 %v3422_v48, %v1747_v0 }
 0x2e8   : > { %v1829_v44 = vmax.f32 %v1748_v59, 0.0 }
 0x2ea   : > { %2552 = vmatmul.msk.f32.gmra.mxu0 %vm1612_vm2, %v1829_v44 }
 0x2ed   : > { %v1750_v2 = vpop.f32.mrf.mxu3 }
 0x2ee   : > { %v1751_v3 = vadd.f32 %v3422_v48, %v1750_v2 }
 0x2f0   : > { %v1830_v49 = vmax.f32 %v1751_v3, 0.0 }
 0x2f2   : > { %2553 = vmatmul.msk.f32.gmra.mxu0 %vm1612_vm2, %v1830_v49 }
 0x2f5   : > { %v1753_v4 = vpop.f32.mrf.mxu3 }
 0x2f6   : > { %v1754_v5 = vadd.f32 %v3422_v48, %v1753_v4 }
 0x2f8   : > { %v1831_v6 = vmax.f32 %v1754_v5, 0.0 }
 0x2fa   : > { %2554 = vmatmul.msk.f32.gmra.mxu0 %vm1612_vm2, %v1831_v6 }
 0x2fd   : > { %v1756_v56 = vpop.f32.mrf.mxu3 }
 0x2fe   : > { %v1757_v8 = vadd.f32 %v3422_v48, %v1756_v56 }
 0x300   : > { %v1832_v62 = vmax.f32 %v1757_v8, 0.0 }
 0x302   : > { %2555 = vmatmul.msk.f32.gmra.mxu0 %vm1612_vm2, %v1832_v62 }
 0x305   : > { %v1759_v9 = vpop.f32.mrf.mxu3 }
 0x306   : > { %v1760_v10 = vadd.f32 %v3422_v48, %v1759_v9 }
 0x308   : > { %v1833_v1 = vmax.f32 %v1760_v10, 0.0 }
 0x30a   : > { %2556 = vmatmul.msk.f32.gmra.mxu0 %vm1612_vm2, %v1833_v1 }
 0x30d   : > { %v1762_v11 = vpop.f32.mrf.mxu3 }
 0x30e   : > { %v1763_v13 = vadd.f32 %v3422_v48, %v1762_v11 }
 0x310   : > { %v1834_v14 = vmax.f32 %v1763_v13, 0.0 }
 0x312   : > { %2557 = vmatmul.msk.f32.gmra.mxu0 %vm1612_vm2, %v1834_v14 }
 0x315   : > { %v1765_v61 = vpop.f32.mrf.mxu3 }
 0x316   : > { %v1766_v7 = vadd.f32 %v3422_v48, %v1765_v61 }
 0x318   : > { %v1835_v15 = vmax.f32 %v1766_v7, 0.0 }
 0x31a   : > { %2558 = vmatmul.msk.f32.gmra.mxu0 %vm1612_vm2, %v1835_v15 }
 0x31d   : > { %v1768_v16 = vpop.f32.mrf.mxu3 }
 0x31e   : > { %v1769_v17 = vadd.f32 %v3422_v48, %v1768_v16 }
 0x320   : > { %v1836_v12 = vmax.f32 %v1769_v17, 0.0 }
 0x322   : > { %2559 = vmatmul.msk.f32.gmra.mxu0 %vm1612_vm2, %v1836_v12 }
 0x325   : > { %v1771_v18 = vpop.f32.mrf.mxu3 }
 0x326   : > { %v1772_v25 = vadd.f32 %v3422_v48, %v1771_v18 }
 0x327   : > { %v3473_v22 = vpop.f32.mrf.mxu0 }
 0x328   : > { %v1837_v19 = vmax.f32 %v1772_v25, 0.0 }
 0x32a   : > { %2560 = vmatmul.msk.f32.gmra.mxu0 %vm1612_vm2, %v1837_v19 }
 0x32d   : > { %v1774_v20 = vpop.f32.mrf.mxu3 }
 0x32e   : > { %v1775_v21 = vadd.f32 %v3422_v48, %v1774_v20 }
 0x330   : > { %v1838_v32 = vmax.f32 %v1775_v21, 0.0  ;;  %v1548_v24 = vpop.f32.mrf.mxu2 }
 0x331   : > { %v1549_v26 = vadd.f32 %v3371_v23, %v1548_v24  ;;  %v3521_v24 = vld [vmem:[%s523_s5] ss:$0 sm:$0xff] }
 0x332   : > { %2561 = vmatmul.msk.f32.gmra.mxu0 %vm1612_vm2, %v1838_v32 }
 0x333   : > { %v1596_v27 = vmax.f32 %v1549_v26, 0.0 }
 0x335   : > { %v1777_v29 = vpop.f32.mrf.mxu3  ;;  %2537 = vmatmul.msk.f32.gmra.mxu3 %vm1612_vm2, %v1596_v27 }
 0x336   : > { %v1778_v30 = vadd.f32 %v3422_v48, %v1777_v29 }
 0x337   : > { %v3479_v31 = vpop.f32.mrf.mxu0 }
 0x338   : > { %v1839_v39 = vmax.f32 %v1778_v30, 0.0  ;;  %v1551_v33 = vpop.f32.mrf.mxu2 }
 0x339   : > { %v1552_v34 = vadd.f32 %v3371_v23, %v1551_v33 }
 0x33a   : > { %2562 = vmatmul.msk.f32.gmra.mxu0 %vm1612_vm2, %v1839_v39 }
 0x33b   : > { %v1597_v35 = vmax.f32 %v1552_v34, 0.0 }
 0x33d   : > { %v1780_v37 = vpop.f32.mrf.mxu3  ;;  %2538 = vmatmul.msk.f32.gmra.mxu3 %vm1612_vm2, %v1597_v35 }
 0x33e   : > { %v1781_v38 = vadd.f32 %v3422_v48, %v1780_v37  ;;  %v3530_v37 = vstv %s2071_s26 }
 0x33f   : > { %v3485_v40 = vpop.f32.mrf.mxu0 }
 0x340   : > { %v1840_v41 = vmax.f32 %v1781_v38, 0.0  ;;  %v1554_v52 = vpop.f32.mrf.mxu2  ;;  %v3532_v38 = vstv %s2137_s12 }
 0x341   : > { %v1555_v42 = vadd.f32 %v3371_v23, %v1554_v52 }
 0x342   : > { %2563 = vmatmul.msk.f32.gmra.mxu0 %vm1612_vm2, %v1840_v41 }
 0x343   : > { %v1598_v43 = vmax.f32 %v1555_v42, 0.0 }
 0x345   : > { %v1783_v45 = vpop.f32.mrf.mxu3  ;;  %2539 = vmatmul.msk.f32.gmra.mxu3 %vm1612_vm2, %v1598_v43 }
 0x346   : > { %v1784_v46 = vadd.f32 %v3422_v48, %v1783_v45 }
 0x347   : > { %v3491_v47 = vpop.f32.mrf.mxu0 }
 0x348   : > { %v1841_v57 = vmax.f32 %v1784_v46, 0.0  ;;  %v1557_v50 = vpop.f32.mrf.mxu2 }
 0x349   : > { %v1558_v53 = vadd.f32 %v3371_v23, %v1557_v50 }
 0x34a   : > { %2564 = vmatmul.msk.f32.gmra.mxu0 %vm1612_vm2, %v1841_v57 }
 0x34b   : > { %v1599_v54 = vmax.f32 %v1558_v53, 0.0 }
 0x34d   : > { %v1786_v58 = vpop.f32.mrf.mxu3  ;;  %2540 = vmatmul.msk.f32.gmra.mxu3 %vm1612_vm2, %v1599_v54 }
 0x34e   : > { %v1787_v60 = vadd.f32 %v3422_v48, %v1786_v58 }
 0x34f   : > { %v3497_v28 = vpop.f32.mrf.mxu0 }
 0x350   : > { %v1842_v63 = vmax.f32 %v1787_v60, 0.0  ;;  %v1560_v36 = vpop.f32.mrf.mxu2 }
 0x351   : > { %v1561_v0 = vadd.f32 %v3371_v23, %v1560_v36 }
 0x352   : > { %2565 = vmatmul.msk.f32.gmra.mxu0 %vm1612_vm2, %v1842_v63 }
 0x353   : > { %v1600_v59 = vmax.f32 %v1561_v0, 0.0 }
 0x355   : > { %v1789_v44 = vpop.f32.mrf.mxu3  ;;  %2541 = vmatmul.msk.f32.gmra.mxu3 %vm1612_vm2, %v1600_v59 }
 0x356   : > { %v1790_v2 = vadd.f32 %v3422_v48, %v1789_v44 }
 0x357   : > { %v3503_v3 = vpop.f32.mrf.mxu0 }
 0x358   : > { %v1843_v49 = vmax.f32 %v1790_v2, 0.0  ;;  %v1563_v4 = vpop.f32.mrf.mxu2 }
 0x359   : > { %v1564_v5 = vadd.f32 %v3371_v23, %v1563_v4 }
 0x35a   : > { %2566 = vmatmul.msk.f32.gmra.mxu0 %vm1612_vm2, %v1843_v49 }
 0x35b   : > { %v1601_v6 = vmax.f32 %v1564_v5, 0.0 }
 0x35d   : > { %v1792_v56 = vpop.f32.mrf.mxu3  ;;  %2542 = vmatmul.msk.f32.gmra.mxu3 %vm1612_vm2, %v1601_v6 }
 0x35e   : > { %v1793_v8 = vadd.f32 %v3422_v48, %v1792_v56 }
 0x35f   : > { %v1993_v62 = vpop.f32.mrf.mxu0 }
 0x360   : > { %v1844_v9 = vmax.f32 %v1793_v8, 0.0  ;;  %v1566_v10 = vpop.f32.mrf.mxu2  ;;  %v1994_v5 = vadd.f32 %v3521_v24, %v1993_v62  ;;  %v1988_v62 = vadd.f32 %v3521_v24, %v3497_v28 }
 0x361   : > { %v1567_v1 = vadd.f32 %v3371_v23, %v1566_v10  ;;  %v1991_v10 = vadd.f32 %v3521_v24, %v3503_v3  ;;  %v1985_v3 = vadd.f32 %v3521_v24, %v3491_v47 }
 0x362   : > { %2567 = vmatmul.msk.f32.gmra.mxu0 %vm1612_vm2, %v1844_v9 }
 0x363   : > { %v1602_v11 = vmax.f32 %v1567_v1, 0.0 }
 0x365   : > { %v1795_v13 = vpop.f32.mrf.mxu3  ;;  %2543 = vmatmul.msk.f32.gmra.mxu3 %vm1612_vm2, %v1602_v11 }
 0x366   : > { %v1796_v14 = vadd.f32 %v3422_v48, %v1795_v13 }
 0x367   : > { %v1996_v61 = vpop.f32.mrf.mxu0 }
 0x368   : > { %v1845_v7 = vmax.f32 %v1796_v14, 0.0  ;;  %v1569_v15 = vpop.f32.mrf.mxu2  ;;  %v1997_v59 = vadd.f32 %v3521_v24, %v1996_v61  ;;  %v2078_v61 = vmax.f32 %v1994_v5, 0.0 }
 0x369   : > { %v1570_v16 = vadd.f32 %v3371_v23, %v1569_v15 }
 0x36a   : > { %2568 = vmatmul.msk.f32.gmra.mxu0 %vm1612_vm2, %v1845_v7  ;;  %v2079_v1 = vmax.f32 %v1997_v59, 0.0 }
 0x36b   : > { %v1603_v17 = vmax.f32 %v1570_v16, 0.0 }
 0x36d   : > { %2544 = vmatmul.msk.f32.gmra.mxu3 %vm1612_vm2, %v1603_v17 }
 0x36f   : > { %v1999_v12 = vpop.f32.mrf.mxu0 }
 0x370   : > { %v2000_v58 = vadd.f32 %v3521_v24, %v1999_v12 }
 0x372   : > { %v2080_v6 = vmax.f32 %v2000_v58, 0.0 }
 0x374   : > { %v2113_v7 = vmul.f32 %v3530_v37, %v2080_v6 }
 0x377   : > { %v2002_v18 = vpop.f32.mrf.mxu0 }
 0x378   : > { %v2003_v46 = vadd.f32 %v3521_v24, %v2002_v18  ;;  %v2077_v18 = vmax.f32 %v1991_v10, 0.0 }
 0x37a   : > { %v2081_v44 = vmax.f32 %v2003_v46, 0.0  ;;  %v2148_v15 = vmul.f32 %v3532_v38, %v2003_v46  ;;  %v2143_v46 = vmul.f32 %v3532_v38, %v1988_v62 }
 0x37c   : > { %v2114_v11 = vmul.f32 %v3530_v37, %v2081_v44 }
 0x37e   : > { %v2180_v28 = vadd.f32 %v2148_v15, %v2114_v11 }
 0x37f   : > { %v2005_v25 = vpop.f32.mrf.mxu0 }
 0x380   : > { %v2006_v41 = vadd.f32 %v3521_v24, %v2005_v25  ;;  %v2112_v25 = vmul.f32 %v3530_v37, %v2079_v1 }
 0x382   : > { %v2082_v60 = vmax.f32 %v2006_v41, 0.0  ;;  %v2149_v13 = vmul.f32 %v3532_v38, %v2006_v41  ;;  %v2144_v41 = vmul.f32 %v3532_v38, %v1991_v10 }
 0x384   : > { %v2115_v56 = vmul.f32 %v3530_v37, %v2082_v60 }
 0x386   : > { %v2181_v17 = vadd.f32 %v2149_v13, %v2115_v56 }
 0x387   : > { %v2008_v19 = vpop.f32.mrf.mxu0 }
 0x388   : > { %v2009_v33 = vadd.f32 %v3521_v24, %v2008_v19  ;;  %v2147_v19 = vmul.f32 %v3532_v38, %v2000_v58 }
 0x38a   : > { %v2083_v57 = vmax.f32 %v2009_v33, 0.0  ;;  %v2150_v8 = vmul.f32 %v3532_v38, %v2009_v33  ;;  %v2179_v47 = vadd.f32 %v2147_v19, %v2113_v7  ;;  %v1976_v33 = vadd.f32 %v3521_v24, %v3473_v22 }
 0x38c   : > { %v2116_v2 = vmul.f32 %v3530_v37, %v2083_v57 }
 0x38e   : > { %v2182_v14 = vadd.f32 %v2150_v8, %v2116_v2 }
 0x38f   : > { %v2011_v20 = vpop.f32.mrf.mxu0 }
 0x390   : > { %v2012_v29 = vadd.f32 %v3521_v24, %v2011_v20  ;;  %v1982_v20 = vadd.f32 %v3521_v24, %v3485_v40 }
 0x392   : > { %v2084_v52 = vmax.f32 %v2012_v29, 0.0  ;;  %v2151_v49 = vmul.f32 %v3532_v38, %v2012_v29  ;;  %v2075_v29 = vmax.f32 %v1985_v3, 0.0 }
 0x394   : > { %v2117_v63 = vmul.f32 %v3530_v37, %v2084_v52 }
 0x396   : > { %v2183_v9 = vadd.f32 %v2151_v49, %v2117_v63  ;;  %v2141_v63 = vmul.f32 %v3532_v38, %v1982_v20 }
 0x397   : > { %v2014_v21 = vpop.f32.mrf.mxu0 }
 0x398   : > { %v2015_v26 = vadd.f32 %v3521_v24, %v2014_v21 }
 0x39a   : > { %v2085_v34 = vmax.f32 %v2015_v26, 0.0  ;;  %v2152_v36 = vmul.f32 %v3532_v38, %v2015_v26  ;;  %v2146_v26 = vmul.f32 %v3532_v38, %v1997_v59 }
 0x39c   : > { %v2118_v50 = vmul.f32 %v3530_v37, %v2085_v34  ;;  %v2178_v40 = vadd.f32 %v2146_v26, %v2112_v25  ;;  %v2074_v34 = vmax.f32 %v1982_v20, 0.0 }
 0x39e   : > { %v2184_v4 = vadd.f32 %v2152_v36, %v2118_v50  ;;  %v2107_v22 = vmul.f32 %v3530_v37, %v2074_v34 }
 0x39f   : > { %v2017_v32 = vpop.f32.mrf.mxu0 }
 0x3a0   : > { %v2018_v23 = vadd.f32 %v3521_v24, %v2017_v32  ;;  %v2076_v32 = vmax.f32 %v1988_v62, 0.0  ;;  %v2173_v2 = vadd.f32 %v2141_v63, %v2107_v22 }
 0x3a2   : > { %v2086_v30 = vmax.f32 %v2018_v23, 0.0  ;;  %v2153_v53 = vmul.f32 %v3532_v38, %v2018_v23  ;;  %v2111_v23 = vmul.f32 %v3530_v37, %v2078_v61 }
 0x3a4   : > { %v2119_v42 = vmul.f32 %v3530_v37, %v2086_v30  ;;  %v2110_v30 = vmul.f32 %v3530_v37, %v2077_v18 }
 0x3a6   : > { %v2185_v0 = vadd.f32 %v2153_v53, %v2119_v42  ;;  %v2176_v57 = vadd.f32 %v2144_v41, %v2110_v30  ;;  %v2072_v53 = vmax.f32 %v1976_v33, 0.0 }
 0x3a7   : > { %v2020_v27 = vpop.f32.mrf.mxu0 }
 0x3a8   : > { %v2021_v39 = vadd.f32 %v3521_v24, %v2020_v27  ;;  %v1979_v27 = vadd.f32 %v3521_v24, %v3479_v31 }
 0x3aa   : > { %v2087_v35 = vmax.f32 %v2021_v39, 0.0  ;;  %v2154_v45 = vmul.f32 %v3532_v38, %v2021_v39  ;;  %v2145_v39 = vmul.f32 %v3532_v38, %v1994_v5  ;;  %v2140_v59 = vmul.f32 %v3532_v38, %v1979_v27 }
 0x3ac   : > { %v2120_v43 = vmul.f32 %v3530_v37, %v2087_v35  ;;  %v2109_v35 = vmul.f32 %v3530_v37, %v2076_v32  ;;  %v2177_v31 = vadd.f32 %v2145_v39, %v2111_v23 }
 0x3ae   : > { %v2186_v54 = vadd.f32 %v2154_v45, %v2120_v43  ;;  %v2073_v43 = vmax.f32 %v1979_v27, 0.0  ;;  %v2108_v45 = vmul.f32 %v3530_v37, %v2075_v29  ;;  %v2175_v58 = vadd.f32 %v2143_v46, %v2109_v35 }
 0x3b0   : > { %2212 = vmatpush.msra.mxu1 %v2186_v54  ;;  %v2142_v54 = vmul.f32 %v3532_v38, %v1985_v3  ;;  %v2106_v60 = vmul.f32 %v3530_v37, %v2073_v43 }
 0x3b2   : > { %2213 = vmatpush.msra.mxu1 %v2185_v0  ;;  %v2174_v36 = vadd.f32 %v2142_v54, %v2108_v45  ;;  %v2105_v0 = vmul.f32 %v3530_v37, %v2072_v53  ;;  %v2172_v5 = vadd.f32 %v2140_v59, %v2106_v60  ;;  %v3626_v59 = vshrl.u32 %v601_v51, 7 }
 0x3b4   : > { %2214 = vmatpush.msra.mxu1 %v2184_v4  ;;  %v2139_v4 = vmul.f32 %v3532_v38, %v1976_v33 }
 0x3b6   : > { %2215 = vmatpush.msra.mxu1 %v2183_v9  ;;  %v2171_v56 = vadd.f32 %v2139_v4, %v2105_v0 }
 0x3b8   : > { %v1798_v16 = vpop.f32.mrf.mxu3  ;;  %2216 = vmatpush.msra.mxu1 %v2182_v14 }
 0x3b9   : > { %v1799_v12 = vadd.f32 %v3422_v48, %v1798_v16 }
 0x3ba   : > { %2217 = vmatpush.msra.mxu1 %v2181_v17  ;;  %v3596_v17 = vpop.f32.mrf.mxu0 }
 0x3bb   : > { %v1846_v21 = vmax.f32 %v1799_v12, 0.0 }
 0x3bc   : > { %2218 = vmatpush.msra.mxu1 %v2180_v28 }
 0x3bd   : > { %2569 = vmatmul.msk.f32.gmra.mxu0 %vm1612_vm2, %v1846_v21 }
 0x3be   : > { %2219 = vmatpush.msra.mxu1 %v2179_v47 }
 0x3c0   : > { %v1801_v52 = vpop.f32.mrf.mxu3  ;;  %2220 = vmatpush.msra.mxu1 %v2178_v40 }
 0x3c1   : > { %v1802_v42 = vadd.f32 %v3422_v48, %v1801_v52 }
 0x3c2   : > { %2221 = vmatpush.msra.mxu1 %v2177_v31  ;;  %v3601_v25 = vpop.f32.mrf.mxu0 }
 0x3c3   : > { %v1847_v50 = vmax.f32 %v1802_v42, 0.0 }
 0x3c4   : > { %2222 = vmatpush.msra.mxu1 %v2176_v57 }
 0x3c5   : > { %2570 = vmatmul.msk.f32.gmra.mxu0 %vm1612_vm2, %v1847_v50 }
 0x3c6   : > { %2223 = vmatpush.msra.mxu1 %v2175_v58 }
 0x3c8   : > { %v1804_v44 = vpop.f32.mrf.mxu3  ;;  %2224 = vmatpush.msra.mxu1 %v2174_v36  ;;  %v3622_v36 = vld [vmem:[%s3699_s2] sm:$0x3] }
 0x3c9   : > { %v1805_v49 = vadd.f32 %v3422_v48, %v1804_v44  ;;  %v2205_v44 = vperm.slane %v3622_v36, 0 }
 0x3ca   : > { %2225 = vmatpush.msra.mxu1 %v2173_v2  ;;  %v3603_v19 = vpop.f32.mrf.mxu0 }
 0x3cb   : > { %v1848_v6 = vmax.f32 %v1805_v49, 0.0  ;;  %vm2207_vm5 = vcmp.eq.s32.totalorder %v3626_v59, %v2205_v44 }
 0x3cc   : > { %2226 = vmatpush.msra.mxu1 %v2172_v5 }
 0x3cd   : > { %2571 = vmatmul.msk.f32.gmra.mxu0 %vm1612_vm2, %v1848_v6 }
 0x3ce   : > { %2227 = vmatpush.msra.mxu1 %v2171_v56 }
 0x3d0   : > { %v1807_v8 = vpop.f32.mrf.mxu3 }
 0x3d1   : > { %v1808_v9 = vadd.f32 %v3422_v48, %v1807_v8 }
 0x3d2   : > { %v3605_v28 = vpop.f32.mrf.mxu0 }
 0x3d3   : > { %v1849_v10 = vmax.f32 %v1808_v9, 0.0 }
 0x3d5   : > { %2572 = vmatmul.msk.f32.gmra.mxu0 %vm1612_vm2, %v1849_v10  ;;  %v2700_v10 = vmov 1.0  }
 0x3d6   : > { %2577 = vmatmul.msk.f32.vlgmr.msra.gmra.mxu1 %vm2207_vm5, %v2700_v10 }
 0x3d8   : > { %v1810_v1 = vpop.f32.mrf.mxu3 }
 0x3d9   : > { %v1811_v11 = vadd.f32 %v3422_v48, %v1810_v1 }
 0x3da   : > { %v2035_v20 = vpop.f32.mrf.mxu0 }
 0x3db   : > { %v1850_v13 = vmax.f32 %v1811_v11, 0.0 }
 0x3dd   : > { %2573 = vmatmul.msk.f32.gmra.mxu0 %vm1612_vm2, %v1850_v13 }
 0x3e0   : > { %v1813_v14 = vpop.f32.mrf.mxu3 }
 0x3e1   : > { %v1814_v62 = vadd.f32 %v3422_v48, %v1813_v14 }
 0x3e2   : > { %v2038_v21 = vpop.f32.mrf.mxu0 }
 0x3e3   : > { %v1851_v61 = vmax.f32 %v1814_v62, 0.0 }
 0x3e5   : > { %2574 = vmatmul.msk.f32.gmra.mxu0 %vm1612_vm2, %v1851_v61  ;;  %v2039_v61 = vadd.f32 %v3521_v24, %v2038_v21 }
 0x3e7   : > { %v2093_v21 = vmax.f32 %v2039_v61, 0.0 }
 0x3e8   : > { %v1816_v7 = vpop.f32.mrf.mxu3 }
 0x3e9   : > { %v1817_v15 = vadd.f32 %v3422_v48, %v1816_v7 }
 0x3ea   : > { %v2041_v32 = vpop.f32.mrf.mxu0 }
 0x3eb   : > { %v1852_v16 = vmax.f32 %v1817_v15, 0.0  ;;  %v2042_v1 = vadd.f32 %v3521_v24, %v2041_v32 }
 0x3ed   : > { %2575 = vmatmul.msk.f32.gmra.mxu0 %vm1612_vm2, %v1852_v16 }
 0x3f0   : > { %v1819_v3 = vpop.f32.mrf.mxu3 }
 0x3f1   : > { %v1820_v12 = vadd.f32 %v3422_v48, %v1819_v3 }
 0x3f2   : > { %v2044_v23 = vpop.f32.mrf.mxu0 }
 0x3f3   : > { %v1853_v18 = vmax.f32 %v1820_v12, 0.0  ;;  %v2045_v6 = vadd.f32 %v3521_v24, %v2044_v23  ;;  %v2036_v12 = vadd.f32 %v3521_v24, %v2035_v20  ;;  %v2030_v20 = vadd.f32 %v3521_v24, %v3603_v19 }
 0x3f4   : > { %v2024_v19 = vadd.f32 %v3521_v24, %v3596_v17 }
 0x3f5   : > { %2576 = vmatmul.msk.f32.vlgmr.msra.gmra.mxu2 %vm1612_vm2, %v1853_v18  ;;  %v2095_v7 = vmax.f32 %v2045_v6, 0.0  ;;  %v2094_v18 = vmax.f32 %v2042_v1, 0.0 }
 0x43a   : > { %v2047_v26 = vpop.f32.mrf.mxu0 }
 0x43b   : > { %v2048_v0 = vadd.f32 %v3521_v24, %v2047_v26 }
 0x43d   : > { %v2096_v11 = vmax.f32 %v2048_v0, 0.0 }
 0x43f   : > { %v2129_v32 = vmul.f32 %v3530_v37, %v2096_v11 }
 0x442   : > { %v2050_v47 = vpop.f32.mrf.mxu0 }
 0x443   : > { %v2051_v22 = vadd.f32 %v3521_v24, %v2050_v47  ;;  %v2033_v47 = vadd.f32 %v3521_v24, %v3605_v28  ;;  %v2027_v28 = vadd.f32 %v3521_v24, %v3601_v25 }
 0x445   : > { %v2097_v56 = vmax.f32 %v2051_v22, 0.0  ;;  %v2164_v23 = vmul.f32 %v3532_v38, %v2051_v22 }
 0x447   : > { %v2130_v15 = vmul.f32 %v3530_v37, %v2097_v56 }
 0x44a   : > { %v2053_v27 = vpop.f32.mrf.mxu0 }
 0x44b   : > { %v2054_v45 = vadd.f32 %v3521_v24, %v2053_v27  ;;  %v2128_v27 = vmul.f32 %v3530_v37, %v2095_v7 }
 0x44d   : > { %v2098_v2 = vmax.f32 %v2054_v45, 0.0  ;;  %v2165_v16 = vmul.f32 %v3532_v38, %v2054_v45 }
 0x44f   : > { %v2131_v13 = vmul.f32 %v3530_v37, %v2098_v2  ;;  %v2206_v2 = vperm.slane %v3622_v36, 1  ;;  %v2701_v36 = vmov (%p524_p5), 0  }
 0x450   : > { %2639 = vset.pattern.permute.xlu0 (%p524_p5), %v2701_v36 }
 0x451   : > { %v2197_v26 = vadd.f32 %v2165_v16, %v2131_v13  ;;  %vm2208_vm6 = vcmp.eq.s32.totalorder %v3626_v59, %v2206_v2 }
 0x452   : > { %v2056_v29 = vpop.f32.mrf.mxu0 }
 0x453   : > { %v2057_v31 = vadd.f32 %v3521_v24, %v2056_v29  ;;  %v2163_v29 = vmul.f32 %v3532_v38, %v2048_v0  ;;  %v2156_v0 = vmul.f32 %v3532_v38, %v2027_v28 }
 0x455   : > { %v2099_v54 = vmax.f32 %v2057_v31, 0.0  ;;  %v2166_v14 = vmul.f32 %v3532_v38, %v2057_v31  ;;  %v2090_v31 = vmax.f32 %v2030_v20, 0.0 }
 0x457   : > { %v2132_v8 = vmul.f32 %v3530_v37, %v2099_v54  ;;  %v2123_v22 = vmul.f32 %v3530_v37, %v2090_v31  ;;  %v2158_v54 = vmul.f32 %v3532_v38, %v2033_v47 }
 0x459   : > { %v2198_v3 = vadd.f32 %v2166_v14, %v2132_v8 }
 0x45a   : > { %v2059_v30 = vpop.f32.mrf.mxu0 }
 0x45b   : > { %v2060_v35 = vadd.f32 %v3521_v24, %v2059_v30  ;;  %v2196_v30 = vadd.f32 %v2164_v23, %v2130_v15 }
 0x45d   : > { %v2100_v46 = vmax.f32 %v2060_v35, 0.0  ;;  %v2167_v9 = vmul.f32 %v3532_v38, %v2060_v35  ;;  %v2126_v35 = vmul.f32 %v3530_v37, %v2093_v21 }
 0x45f   : > { %v2133_v49 = vmul.f32 %v3530_v37, %v2100_v46  ;;  %v2089_v46 = vmax.f32 %v2027_v28, 0.0 }
 0x461   : > { %v2199_v62 = vadd.f32 %v2167_v9, %v2133_v49  ;;  %v2122_v17 = vmul.f32 %v3530_v37, %v2089_v46  ;;  %v2155_v49 = vmul.f32 %v3532_v38, %v2024_v19 }
 0x462   : > { %v2062_v39 = vpop.f32.mrf.mxu0 }
 0x463   : > { %v2063_v33 = vadd.f32 %v3521_v24, %v2062_v39  ;;  %v2092_v39 = vmax.f32 %v2036_v12, 0.0 }
 0x465   : > { %v2101_v42 = vmax.f32 %v2063_v33, 0.0  ;;  %v2168_v4 = vmul.f32 %v3532_v38, %v2063_v33  ;;  %v2195_v33 = vadd.f32 %v2163_v29, %v2129_v32 }
 0x467   : > { %v2134_v58 = vmul.f32 %v3530_v37, %v2101_v42  ;;  %v2125_v42 = vmul.f32 %v3530_v37, %v2092_v39 }
 0x469   : > { %v2200_v51 = vadd.f32 %v2168_v4, %v2134_v58  ;;  %v2157_v58 = vmul.f32 %v3532_v38, %v2030_v20  ;;  %v2188_v4 = vadd.f32 %v2156_v0, %v2122_v17 }
 0x46a   : > { %v2065_v48 = vpop.f32.mrf.mxu0 }
 0x46b   : > { %v2066_v40 = vadd.f32 %v3521_v24, %v2065_v48  ;;  %v2127_v48 = vmul.f32 %v3530_v37, %v2094_v18  ;;  %v2189_v44 = vadd.f32 %v2157_v58, %v2123_v22 }
 0x46d   : > { %v2102_v41 = vmax.f32 %v2066_v40, 0.0  ;;  %v2169_v60 = vmul.f32 %v3532_v38, %v2066_v40  ;;  %v2162_v40 = vmul.f32 %v3532_v38, %v2045_v6  ;;  %v2229_v6 = vpop.f32.mrf.mxu1 }
 0x46f   : > { %v2135_v57 = vmul.f32 %v3530_v37, %v2102_v41  ;;  %v2161_v41 = vmul.f32 %v3532_v38, %v2042_v1 }
 0x471   : > { %v2201_v5 = vadd.f32 %v2169_v60, %v2135_v57  ;;  %v2193_v45 = vadd.f32 %v2161_v41, %v2127_v48  ;;  %v2159_v57 = vmul.f32 %v3532_v38, %v2036_v12 }
 0x478   : > { %v2068_v34 = vpop.f32.mrf.mxu2 }
 0x479   : > { %v2069_v52 = vadd.f32 %v3521_v24, %v2068_v34  ;;  %v2091_v34 = vmax.f32 %v2033_v47, 0.0  ;;  %v2191_v24 = vadd.f32 %v2159_v57, %v2125_v42 }
 0x47b   : > { %v2103_v43 = vmax.f32 %v2069_v52, 0.0  ;;  %v2170_v53 = vmul.f32 %v3532_v38, %v2069_v52  ;;  %v2194_v52 = vadd.f32 %v2162_v40, %v2128_v27  ;;  %v2124_v25 = vmul.f32 %v3530_v37, %v2091_v34 }
 0x47d   : > { %v2136_v50 = vmul.f32 %v3530_v37, %v2103_v43  ;;  %v2160_v43 = vmul.f32 %v3532_v38, %v2039_v61  ;;  %v2190_v60 = vadd.f32 %v2158_v54, %v2124_v25  ;;  %v2257_v38 = vld [vmem:[%s3701_s4] sm:$0xff] (%p524_p5) }
 0x47e   : > { %2260 = vperm.xlu0 (%p524_p5), %2639, %v2257_v38  }
 0x47f   : > { %v2202_v63 = vadd.f32 %v2170_v53, %v2136_v50  ;;  %v2192_v50 = vadd.f32 %v2160_v43, %v2126_v35  ;;  %v2088_v53 = vmax.f32 %v2024_v19, 0.0 }
 0x481   : > { %2232 = vmatpush.msra.mxu3 %v2202_v63  ;;  %v2121_v63 = vmul.f32 %v3530_v37, %v2088_v53 }
 0x483   : > { %2233 = vmatpush.msra.mxu3 %v2201_v5  ;;  %v2187_v5 = vadd.f32 %v2155_v49, %v2121_v63 }
 0x485   : > { %2234 = vmatpush.msra.mxu3 %v2200_v51 }
 0x487   : > { %2235 = vmatpush.msra.mxu3 %v2199_v62 }
 0x489   : > { %2236 = vmatpush.msra.mxu3 %v2198_v3 }
 0x48b   : > { %2237 = vmatpush.msra.mxu3 %v2197_v26 }
 0x48d   : > { %2238 = vmatpush.msra.mxu3 %v2196_v30 }
 0x48f   : > { %2239 = vmatpush.msra.mxu3 %v2195_v33 }
 0x491   : > { %2240 = vmatpush.msra.mxu3 %v2194_v52 }
 0x493   : > { %2241 = vmatpush.msra.mxu3 %v2193_v45 }
 0x495   : > { %2242 = vmatpush.msra.mxu3 %v2192_v50 }
 0x497   : > { %2243 = vmatpush.msra.mxu3 %v2191_v24 }
 0x499   : > { %2244 = vmatpush.msra.mxu3 %v2190_v60 }
 0x49b   : > { %2245 = vmatpush.msra.mxu3 %v2189_v44 }
 0x49d   : > { %2246 = vmatpush.msra.mxu3 %v2188_v4 }
 0x49f   : > { %2247 = vmatpush.msra.mxu3 %v2187_v5 }
 0x4a0   : > { %2578 = vmatmul.msk.f32.vlgmr.msra.gmra.mxu3 %vm2208_vm6, %v2700_v10 }
 0x4f0   : > { %v2261_v9 = vpop.permute.xlu0 (%p524_p5), %2260 }
 0x522   : > { %2255 = sbr.rel (!%p524_p5) target bundleno = 1329 (0x531), region = 76 }
 0x523   : > { %v2249_v56 = vpop.f32.mrf.mxu3 }
 0x524   : > { %v2250_v37 = vadd.f32 %v2249_v56, %v2229_v6 }
 0x526   : > { %2253 = vst [vmem:[#allocation2] sm:$0xff] %v2250_v37 }
 0x52d   : > { %v2256_v8 = vld [vmem:[#allocation2] sm:$0xff] }
 0x52e   : > { %v2263_v59 = vmul.f32 %v2261_v9, %v2256_v8 }
 0x530   : > { %2264 = vst [vmem:[#allocation3] sm:$0xff] %v2263_v59 }
 0x531 PF: > { %p2265_p6 = scmp.eq.s32.totalorder %s2687_s17, 1 }
 0x532   : > { %v2271_v51 = vld [vmem:[%s3701_s4] sm:$0xff] (%p2265_p6)  ;;  %v2702_v10 = vmov (%p2265_p6), 0   ;;  %vm2278_vm7 = vcmp.eq.s32.totalorder (%p2265_p6), %v2965_v55, 0 }
 0x533   : > { %2269 = sbr.rel (!%p2265_p6) target bundleno = 1453 (0x5ad), region = 80  ;;  %2640 = vset.pattern.permute.xlu0 (%p2265_p6), %v2702_v10 }
 0x534   : > { %2274 = vperm.xlu0 (%p2265_p6), %2640, %v2271_v51  }
 0x537   : > { %v2270_v1 = vld [vmem:[#allocation2] sm:$0xff] (%p2265_p6) }
 0x5a6   : > { %v2275_v11 = vpop.permute.xlu0 %2274 }
 0x5a7   : > { %v2277_v13 = vmul.f32 %v2275_v11, %v2270_v1 }
 0x5a9   : > { %v2279_v14 = vmax.f32 %v2277_v13, 0.0 }
 0x5ab   : > { %v2280_v62 = vsel %vm2278_vm7, %v2279_v14, %v2277_v13 }
 0x5ac   : > { %2281 = vst [vmem:[#allocation4] sm:$0xff] %v2280_v62 }
 0x5ad PF: > { %s3714_s16 = sadd.s32 4294967295, %s2695_s19   ;;  %s2290_s28 = sshll.u32 %s3708_s11, 4  ;;  %s2291_s28 = int_to_ptr.hbm [resolvable:$true] %s2290_s28 }
 0x5ae   : > { %p2600_p7 = scmp.eq.s32.totalorder %s3714_s16, 1  ;;  %s2703_s29 = smov [#allocation4]  }
 0x5af   : > { %s2288_s27 = sshll.u32 %s2703_s29, 4  ;;  %s2289_s27 = int_to_ptr.vmem [resolvable:$true] %s2288_s27 }
 0x5b0   : > { %2597 = dma.vmem_to_hbm [thread:$0]  (%p2600_p7), %s2289_s27, 128, %s2291_s28, [#allocation5]  }
 0x5b1   : > { %2682 = dma.done.wait (%p2600_p7), [#allocation5], 128  }
 0x5b2   : > { %2684 = vsyncadd (%p2600_p7), [#allocation5], 4294967168 }
 0x5b3 PF: > { %s22_s19 = sadd.s32 1, %s2695_s19   ;;  %s3715_s17 = sld [smem:[#allocation7_spill]] }
 0x5b4   : > { %p19_p8 = scmp.ge.s32.totalorder %s22_s19, 4   ;;  %s3716_s18 = sld [smem:[#allocation8_spill]] }
 0x5b6   :  { %21 = sbr.rel (!%p19_p8) target bundleno = 4 (0x4), region = 131 }
 0x5bb   :  { %2304 = vsyncpa [#allocation5], 1 }
 0x5bc   :  { %2306 = vsyncpa [#allocation5 + $0x1], 1 }

</bundles_post_ra>
